<compile_context>
chip_gen: v7x
topology: tpu7x:2x2x1
jax: 0.10.0
libtpu: 0.0.40
codegen_flags: <defaults>
</compile_context>

<pallas_src>
import functools

import numpy as np

import jax
import jax.numpy as jnp
from jax.experimental import pallas as pl
from jax.experimental.pallas import tpu as pltpu


def _decomp_kernel(x_ref, w_ref, res_ref, mean_ref, *, inv_k):
    """One block of rows.

    x_ref:   (BR, LC)  -- BR batch rows, time-major / channel-interleaved
    w_ref:   (LC, LC)  -- block-banded tap-count matrix kron(W_taps, I_C)
    res/mean_ref: (BR, LC)
    """
    x = x_ref[...]                                           # (BR, LC), model dtype
    # Moving sum via a single block-banded MXU matmul (native dtype in,
    # f32 accumulate), then scale by 1/k on the VPU (free slot).
    mean_f32 = jnp.dot(x, w_ref[...],
                       preferred_element_type=jnp.float32)   # (BR, LC), f32
    mean_f32 = mean_f32 * jnp.float32(inv_k)
    mean = mean_f32.astype(mean_ref.dtype)
    mean_ref[...] = mean
    # res = x - mean with mean already in the model dtype (PyTorch ordering).
    res_ref[...] = (x - mean).astype(res_ref.dtype)


def _build_tap_counts(L, kernel_size):
    """W[j, l] = #{t in [-pad, pad] : clip(l + t, 0, L-1) == j}  (integer taps)."""
    pad = (kernel_size - 1) // 2
    w = np.zeros((L, L), np.float32)
    cols = np.arange(L)
    for t in range(-pad, pad + 1):
        src = np.clip(cols + t, 0, L - 1)
        w[src, cols] += 1.0
    return w


@functools.partial(jax.jit, static_argnums=(1,))
def series_decomp(x, kernel_size):
    """x: (B, L, C).  Returns (res, moving_mean), both (B, L, C)."""
    assert kernel_size % 2 == 1, "odd kernel_size required so that L_out == L"
    B, L, C = x.shape
    LC = L * C

    # Contiguous reshape: free (metadata only), no transpose, no extra HBM pass.
    x_flat = x.reshape(B, LC)

    # Block-banded averaging matrix: W'[j*C+c', l*C+c] = taps[j, l] * (c' == c).
    # Tap counts are small integers -> exact in bf16 as well as f32.
    # NOTE (v7x / long sequences): W' is O((L*C)^2); for L*C beyond a few
    # thousand, tile the contraction over an "arbitrary" K grid axis instead.
    w_block = np.kron(_build_tap_counts(L, kernel_size),
                      np.eye(C, dtype=np.float32))           # (LC, LC)
    w = jnp.asarray(w_block, dtype=x.dtype)

    itemsize = jnp.dtype(x.dtype).itemsize

    # Row-block heuristic: ~2 MiB of input per grid step (measured ~85-86% of
    # HBM roofline at 1-4 MiB tiles), sublane-aligned, and no forced split when
    # the whole problem fits one block (single-TC v5e/v6e: grid is a serial
    # loop, extra steps are pure overhead).
    if B <= 8:
        br = B                                    # full first dim -> always legal
    else:
        target_rows = max(8, (2 << 20) // max(1, LC * itemsize))
        br = min(B, target_rows)
        if br < B:
            br = max(8, (br // 8) * 8)
    grid = (pl.cdiv(B, br),)

    # Minor dim of every block is LC (the full array minor dim), so the specs
    # are legal for any LC; for DLinear-like shapes (e.g. 96*8 = 768) it is a
    # multiple of 128 -> fully dense, unmasked vector stores.
    row_spec = pl.BlockSpec((br, LC), lambda i: (i, 0))
    w_spec = pl.BlockSpec((LC, LC), lambda i: (0, 0))         # constant block

    # VMEM budget: double-buffered W' + in/out blocks + f32 intermediates.
    w_bytes = LC * LC * itemsize
    blk_bytes = br * LC * itemsize
    est = 2 * (w_bytes + 3 * blk_bytes) + 2 * br * LC * 4 + (2 << 20)
    vmem_limit = int(min(max(32 << 20, est), 64 << 20))

    res_flat, mean_flat = pl.pallas_call(
        functools.partial(_decomp_kernel, inv_k=1.0 / float(kernel_size)),
        out_shape=(jax.ShapeDtypeStruct((B, LC), x.dtype),    # res
                   jax.ShapeDtypeStruct((B, LC), x.dtype)),   # moving_mean
        grid_spec=pltpu.PrefetchScalarGridSpec(
            num_scalar_prefetch=0,
            grid=grid,
            in_specs=[row_spec, w_spec],
            out_specs=(row_spec, row_spec),
        ),
        compiler_params=pltpu.CompilerParams(
            dimension_semantics=("parallel",),
            vmem_limit_bytes=vmem_limit,
        ),
    )(x_flat, w)

    # Contiguous reshapes back: free.
    return res_flat.reshape(B, L, C), mean_flat.reshape(B, L, C)


def _series_decomp_ref(x, kernel_size):
    """Pure-JAX reference mirroring the PyTorch module."""
    pad = (kernel_size - 1) // 2
    front = jnp.repeat(x[:, :1, :], pad, axis=1)
    end = jnp.repeat(x[:, -1:, :], pad, axis=1)
    xp = jnp.concatenate([front, x, end], axis=1)
    L = x.shape[1]
    windows = jnp.stack([xp[:, t:t + L, :] for t in range(kernel_size)], axis=0)
    mean = jnp.mean(windows, axis=0)
    return x - mean, mean


if __name__ == "__main__":
    key = jax.random.PRNGKey(0)
    B, L, C = 4, 96, 8           # small, DLinear-like shapes (L*C = 768 lanes)
    kernel_size = 25             # DLinear default decomposition kernel

    x = jax.random.normal(key, (B, L, C), dtype=jnp.float32)

    res, mean = series_decomp(x, kernel_size)
    jax.block_until_ready((res, mean))

    res_exp, mean_exp = _series_decomp_ref(x, kernel_size)

    assert res.shape == (B, L, C) and mean.shape == (B, L, C)
    # Tolerance covers the MXU f32 accumulation path on all generations.
    assert jnp.allclose(mean, mean_exp, atol=5e-3, rtol=5e-3)
    assert jnp.allclose(res, res_exp, atol=5e-3, rtol=5e-3)
    # Structural identity: decomposition must reconstruct x (f32 I/O path).
    assert jnp.allclose(res + mean, x, atol=1e-5, rtol=1e-5)

    print("KERNEL_OK")
</pallas_src>

<mosaic_0001>
module attributes {stable_mosaic.version = 11 : i64} {
  func.func @_decomp_kernel(%arg0: i32, %arg1: memref<4x768xf32, #tpu.memory_space<vmem>>, %arg2: memref<768x768xf32, #tpu.memory_space<vmem>>, %arg3: memref<4x768xf32, #tpu.memory_space<vmem>>, %arg4: memref<4x768xf32, #tpu.memory_space<vmem>>) attributes {dimension_semantics = [#tpu.dimension_semantics<parallel>], iteration_bounds = array<i64: 1>, scalar_prefetch = 0 : i64, scratch_operands = 0 : i64, tpu.core_type = #tpu.core_type<tc>, window_params = [{transform_indices = @transform_0, window_bounds = array<i64: 4, 768>}, {pipeline_mode = #tpu.pipeline_mode<synchronous>, transform_indices = @transform_1, window_bounds = array<i64: 768, 768>}, {transform_indices = @transform_2, window_bounds = array<i64: 4, 768>}, {transform_indices = @transform_3, window_bounds = array<i64: 4, 768>}]} {
    %c0 = arith.constant 0 : index
    %c0_0 = arith.constant 0 : index
    %0 = vector.load %arg1[%c0, %c0_0] : memref<4x768xf32, #tpu.memory_space<vmem>>, vector<4x768xf32>
    %c0_1 = arith.constant 0 : index
    %c0_2 = arith.constant 0 : index
    %1 = vector.load %arg2[%c0_1, %c0_2] : memref<768x768xf32, #tpu.memory_space<vmem>>, vector<768x768xf32>
    %cst = arith.constant dense<0.000000e+00> : vector<4x768xf32>
    %2 = tpu.matmul %0, %1, %cst {dimension_numbers = #tpu.dot_dimension_numbers<[1], [0], [0], [1], [0, 0, 1, 1], [], []>} : vector<4x768xf32>, vector<768x768xf32>, vector<4x768xf32> -> vector<4x768xf32>
    %cst_3 = arith.constant 4.000000e-02 : f32
    %3 = vector.broadcast %cst_3 : f32 to vector<4x768xf32>
    %4 = arith.mulf %2, %3 : vector<4x768xf32>
    %c0_4 = arith.constant 0 : index
    %c0_5 = arith.constant 0 : index
    %5 = vector.load %arg4[%c0_4, %c0_5] : memref<4x768xf32, #tpu.memory_space<vmem>>, vector<4x768xf32>
    tpu.vector_store %arg4[%c0_4, %c0_5], %4 {strides = array<i32>} : memref<4x768xf32, #tpu.memory_space<vmem>>, vector<4x768xf32>,
    %6 = arith.subf %0, %4 : vector<4x768xf32>
    %c0_6 = arith.constant 0 : index
    %c0_7 = arith.constant 0 : index
    %7 = vector.load %arg3[%c0_6, %c0_7] : memref<4x768xf32, #tpu.memory_space<vmem>>, vector<4x768xf32>
    tpu.vector_store %arg3[%c0_6, %c0_7], %6 {strides = array<i32>} : memref<4x768xf32, #tpu.memory_space<vmem>>, vector<4x768xf32>,
    return
  }
  func.func @transform_0(%arg0: i32) -> (i32, i32) {
    %c0_i32 = arith.constant 0 : i32
    %c0_i32_0 = arith.constant 0 : i32
    return %arg0, %c0_i32 : i32, i32
  }
  func.func @transform_1(%arg0: i32) -> (i32, i32) {
    %c0_i32 = arith.constant 0 : i32
    %c0_i32_0 = arith.constant 0 : i32
    %c0_i32_1 = arith.constant 0 : i32
    return %c0_i32, %c0_i32_0 : i32, i32
  }
  func.func @transform_2(%arg0: i32) -> (i32, i32) {
    %c0_i32 = arith.constant 0 : i32
    %c0_i32_0 = arith.constant 0 : i32
    return %arg0, %c0_i32 : i32, i32
  }
  func.func @transform_3(%arg0: i32) -> (i32, i32) {
    %c0_i32 = arith.constant 0 : i32
    %c0_i32_0 = arith.constant 0 : i32
    return %arg0, %c0_i32 : i32, i32
  }
}

</mosaic_0001>

<bundles_post_ra>
// kernel: series_decomp.1
= control target key start
LH: loop header
LB: loop body
LE: loop exit
PB: predicated region body
PF: predicated region fallthrough
CT: control target
= control target key end

     0   :  { %9 = vsyncpa [#allocation3], 0  ;;  %s1911_s12 = smov [#allocation2]   ;;  %s2033_s0 = inlined_call_operand.vmem [shape: f32[4,768], index: 0, kind: input, shape index: {}]   ;;  %s2034_s1 = inlined_call_operand.hbm [shape: f32[768,768], index: 1, kind: input, shape index: {}]   ;;  %s2035_s2 = inlined_call_operand.vmem [shape: f32[4,768], index: 2, kind: output, shape index: {0}]   ;;  %s2036_s3 = inlined_call_operand.vmem [shape: f32[4,768], index: 3, kind: output, shape index: {1}]  }
   0x1   :  { %s17_s13 = sshll.u32 %s1911_s12, 4  ;;  %s1887_s16 = scalar_lea.hbm %s2034_s1, 73728  ;;  %s18_s13 = int_to_ptr.vmem [resolvable:$true] %s17_s13 }
   0x2   :  { %p1888_p0 = scmp.ne.s32.totalorder %s2034_s1, %s1887_s16  ;;  %p1891_p1 = scmp.lt.u32.totalorder %s1887_s16, %s2034_s1 }
   0x4   :  { %p1893_p2 = pnand %p1891_p1, %p1888_p0 }
   0x6   :  { %1896 = shalt.err (!%p1893_p2)
}
   0x7   :  { %s1897_s21 = scalar_lea.vmem %s18_s13, 73728  ;;  %p1902_p4 = scmp.lt.s32.totalorder %s18_s13, %s18_s13 }
   0x8   :  { %p1898_p3 = scmp.ne.s32.totalorder %s18_s13, %s1897_s21  ;;  %p1903_p5 = scmp.lt.s32.totalorder %s1897_s21, %s1897_s21 }
   0xa   :  { %p1904_p6 = por %p1903_p5, %p1902_p4 }
   0xc   :  { %p1905_p7 = pnand %p1904_p6, %p1898_p3 }
   0xe   :  { %1908 = shalt.err (!%p1905_p7)
}
   0xf   :  { %s1912_s22 = smov 768   ;;  %s1913_s23 = smov 48  }
  0x10   :  { %23 = dma.hbm_to_vmem [thread:$0]  %s2034_s1, 73728, %s18_s13, [#allocation3], %s1912_s22, %s1912_s22, %s1913_s23  }
  0x11   :  { %1909 = dma.done.wait [#allocation3], 73728  }
  0x12   :  { %1910 = vsyncadd [#allocation3], 4294893568  ;;  %v31_v0 = vld [vmem:[#allocation2 + $0x8] sm:$0xff]  ;;  %v37_v1 = vld [vmem:[#allocation2 + $0x38] sm:$0xff] }
  0x13   :  { %v223_v2 = vld [vmem:[#allocation2 + $0x608] sm:$0xff]  ;;  %v1290_v3 = vpack.c.bf16 %v37_v1, %v31_v0  ;;  %v229_v4 = vld [vmem:[#allocation2 + $0x638] sm:$0xff]  ;;  %v30_v5 = vld [vmem:[#allocation2] sm:$0xff] }
  0x14   :  { %v36_v6 = vld [vmem:[#allocation2 + $0x30] sm:$0xff]  ;;  %v1354_v7 = vpack.c.bf16 %v229_v4, %v223_v2  ;;  %v222_v9 = vld [vmem:[#allocation2 + $0x600] sm:$0xff]  ;;  %v43_v11 = vld [vmem:[#allocation2 + $0x68] sm:$0xff] }
  0x15   :  { %v1292_v8 = vpack.c.bf16 %v36_v6, %v30_v5  ;;  %v228_v10 = vld [vmem:[#allocation2 + $0x630] sm:$0xff]  ;;  %1291 = vmatprep.subr.bf16.mxu1 %v1290_v3  ;;  %v49_v13 = vld [vmem:[#allocation2 + $0x98] sm:$0xff]  ;;  %v235_v14 = vld [vmem:[#allocation2 + $0x668] sm:$0xff] }
  0x16   :  { %v1356_v12 = vpack.c.bf16 %v228_v10, %v222_v9  ;;  %v241_v15 = vld [vmem:[#allocation2 + $0x698] sm:$0xff]  ;;  %1355 = vmatprep.subr.bf16.mxu0 %v1354_v7  ;;  %v1294_v16 = vpack.c.bf16 %v49_v13, %v43_v11  ;;  %v42_v18 = vld [vmem:[#allocation2 + $0x60] sm:$0xff]  ;;  %v48_v19 = vld [vmem:[#allocation2 + $0x90] sm:$0xff] }
  0x17   :  { %1293 = vmatpush1.bf16.msra.mxu1 %v1292_v8  ;;  %v1358_v17 = vpack.c.bf16 %v241_v15, %v235_v14  ;;  %v234_v20 = vld [vmem:[#allocation2 + $0x660] sm:$0xff]  ;;  %v1296_v21 = vpack.c.bf16 %v48_v19, %v42_v18  ;;  %v240_v22 = vld [vmem:[#allocation2 + $0x690] sm:$0xff]  ;;  %v55_v23 = vld [vmem:[#allocation2 + $0xc8] sm:$0xff] }
  0x18   :  { %1357 = vmatpush1.bf16.msra.mxu0 %v1356_v12  ;;  %v61_v24 = vld [vmem:[#allocation2 + $0xf8] sm:$0xff]  ;;  %1295 = vmatprep.subr.bf16.mxu1 %v1294_v16  ;;  %v1360_v25 = vpack.c.bf16 %v240_v22, %v234_v20  ;;  %v247_v27 = vld [vmem:[#allocation2 + $0x6c8] sm:$0xff]  ;;  %v54_v29 = vld [vmem:[#allocation2 + $0xc0] sm:$0xff] }
  0x19   :  { %1359 = vmatprep.subr.bf16.mxu0 %v1358_v17  ;;  %v1298_v26 = vpack.c.bf16 %v61_v24, %v55_v23  ;;  %v253_v28 = vld [vmem:[#allocation2 + $0x6f8] sm:$0xff]  ;;  %v60_v31 = vld [vmem:[#allocation2 + $0xf0] sm:$0xff]  ;;  %v246_v32 = vld [vmem:[#allocation2 + $0x6c0] sm:$0xff] }
  0x1a   :  { %v1362_v30 = vpack.c.bf16 %v253_v28, %v247_v27  ;;  %v252_v33 = vld [vmem:[#allocation2 + $0x6f0] sm:$0xff]  ;;  %v1300_v34 = vpack.c.bf16 %v60_v31, %v54_v29  ;;  %v67_v35 = vld [vmem:[#allocation2 + $0x128] sm:$0xff]  ;;  %v73_v36 = vld [vmem:[#allocation2 + $0x158] sm:$0xff] }
  0x1b   :  { %1297 = vmatpush1.bf16.msra.mxu1 %v1296_v21  ;;  %v259_v37 = vld [vmem:[#allocation2 + $0x728] sm:$0xff]  ;;  %v1364_v38 = vpack.c.bf16 %v252_v33, %v246_v32  ;;  %v1302_v39 = vpack.c.bf16 %v73_v36, %v67_v35  ;;  %v265_v40 = vld [vmem:[#allocation2 + $0x758] sm:$0xff]  ;;  %v66_v41 = vld [vmem:[#allocation2 + $0x120] sm:$0xff] }
  0x1c   :  { %1361 = vmatpush1.bf16.msra.mxu0 %v1360_v25  ;;  %1299 = vmatprep.subr.bf16.mxu1 %v1298_v26  ;;  %v72_v42 = vld [vmem:[#allocation2 + $0x150] sm:$0xff]  ;;  %v1366_v43 = vpack.c.bf16 %v265_v40, %v259_v37  ;;  %v258_v44 = vld [vmem:[#allocation2 + $0x720] sm:$0xff]  ;;  %v79_v46 = vld [vmem:[#allocation2 + $0x188] sm:$0xff] }
  0x1d   :  { %1363 = vmatprep.subr.bf16.mxu0 %v1362_v30  ;;  %v264_v45 = vld [vmem:[#allocation2 + $0x750] sm:$0xff]  ;;  %v85_v47 = vld [vmem:[#allocation2 + $0x1b8] sm:$0xff]  ;;  %v271_v48 = vld [vmem:[#allocation2 + $0x788] sm:$0xff]  ;;  %v1304_v50 = vpack.c.bf16 %v72_v42, %v66_v41 }
  0x1e   :  { %v277_v49 = vld [vmem:[#allocation2 + $0x7b8] sm:$0xff]  ;;  %v1368_v51 = vpack.c.bf16 %v264_v45, %v258_v44  ;;  %v1306_v52 = vpack.c.bf16 %v85_v47, %v79_v46  ;;  %v78_v53 = vld [vmem:[#allocation2 + $0x180] sm:$0xff]  ;;  %v84_v54 = vld [vmem:[#allocation2 + $0x1b0] sm:$0xff] }
  0x1f   :  { %1301 = vmatpush1.bf16.msra.mxu1 %v1300_v34  ;;  %v270_v55 = vld [vmem:[#allocation2 + $0x780] sm:$0xff]  ;;  %v1370_v56 = vpack.c.bf16 %v277_v49, %v271_v48  ;;  %v276_v57 = vld [vmem:[#allocation2 + $0x7b0] sm:$0xff]  ;;  %v91_v58 = vld [vmem:[#allocation2 + $0x1e8] sm:$0xff]  ;;  %v1308_v62 = vpack.c.bf16 %v84_v54, %v78_v53 }
  0x20   :  { %1365 = vmatpush1.bf16.msra.mxu0 %v1364_v38  ;;  %1303 = vmatprep.subr.bf16.mxu1 %v1302_v39  ;;  %v97_v59 = vld [vmem:[#allocation2 + $0x218] sm:$0xff]  ;;  %v283_v60 = vld [vmem:[#allocation2 + $0x7e8] sm:$0xff]  ;;  %v1372_v63 = vpack.c.bf16 %v276_v57, %v270_v55  ;;  %v90_v1 = vld [vmem:[#allocation2 + $0x1e0] sm:$0xff] }
  0x21   :  { %1367 = vmatprep.subr.bf16.mxu0 %v1366_v43  ;;  %v289_v61 = vld [vmem:[#allocation2 + $0x818] sm:$0xff]  ;;  %v1310_v0 = vpack.c.bf16 %v97_v59, %v91_v58  ;;  %v96_v2 = vld [vmem:[#allocation2 + $0x210] sm:$0xff]  ;;  %v282_v3 = vld [vmem:[#allocation2 + $0x7e0] sm:$0xff] }
  0x22   :  { %v1374_v4 = vpack.c.bf16 %v289_v61, %v283_v60  ;;  %v288_v5 = vld [vmem:[#allocation2 + $0x810] sm:$0xff]  ;;  %v103_v6 = vld [vmem:[#allocation2 + $0x248] sm:$0xff]  ;;  %v109_v7 = vld [vmem:[#allocation2 + $0x278] sm:$0xff]  ;;  %v1312_v10 = vpack.c.bf16 %v96_v2, %v90_v1 }
  0x23   :  { %1305 = vmatpush1.bf16.msra.mxu1 %v1304_v50  ;;  %v295_v8 = vld [vmem:[#allocation2 + $0x848] sm:$0xff]  ;;  %v301_v9 = vld [vmem:[#allocation2 + $0x878] sm:$0xff]  ;;  %v1376_v11 = vpack.c.bf16 %v288_v5, %v282_v3  ;;  %v1314_v12 = vpack.c.bf16 %v109_v7, %v103_v6  ;;  %v102_v13 = vld [vmem:[#allocation2 + $0x240] sm:$0xff] }
  0x24   :  { %1369 = vmatpush1.bf16.msra.mxu0 %v1368_v51  ;;  %1307 = vmatprep.subr.bf16.mxu1 %v1306_v52  ;;  %v108_v14 = vld [vmem:[#allocation2 + $0x270] sm:$0xff]  ;;  %v294_v15 = vld [vmem:[#allocation2 + $0x840] sm:$0xff]  ;;  %v1378_v16 = vpack.c.bf16 %v301_v9, %v295_v8  ;;  %v115_v18 = vld [vmem:[#allocation2 + $0x2a8] sm:$0xff] }
  0x25   :  { %1371 = vmatprep.subr.bf16.mxu0 %v1370_v56  ;;  %v300_v17 = vld [vmem:[#allocation2 + $0x870] sm:$0xff]  ;;  %v121_v19 = vld [vmem:[#allocation2 + $0x2d8] sm:$0xff]  ;;  %v307_v20 = vld [vmem:[#allocation2 + $0x8a8] sm:$0xff]  ;;  %v1316_v22 = vpack.c.bf16 %v108_v14, %v102_v13 }
  0x26   :  { %v313_v21 = vld [vmem:[#allocation2 + $0x8d8] sm:$0xff]  ;;  %v1380_v23 = vpack.c.bf16 %v300_v17, %v294_v15  ;;  %v1318_v24 = vpack.c.bf16 %v121_v19, %v115_v18  ;;  %v114_v25 = vld [vmem:[#allocation2 + $0x2a0] sm:$0xff]  ;;  %v120_v26 = vld [vmem:[#allocation2 + $0x2d0] sm:$0xff] }
  0x27   :  { %1309 = vmatpush1.bf16.msra.mxu1 %v1308_v62  ;;  %v306_v27 = vld [vmem:[#allocation2 + $0x8a0] sm:$0xff]  ;;  %v1382_v28 = vpack.c.bf16 %v313_v21, %v307_v20  ;;  %v312_v29 = vld [vmem:[#allocation2 + $0x8d0] sm:$0xff]  ;;  %v127_v30 = vld [vmem:[#allocation2 + $0x308] sm:$0xff]  ;;  %v1320_v34 = vpack.c.bf16 %v120_v26, %v114_v25 }
  0x28   :  { %1373 = vmatpush1.bf16.msra.mxu0 %v1372_v63  ;;  %1311 = vmatprep.subr.bf16.mxu1 %v1310_v0  ;;  %v133_v31 = vld [vmem:[#allocation2 + $0x338] sm:$0xff]  ;;  %v319_v32 = vld [vmem:[#allocation2 + $0x908] sm:$0xff]  ;;  %v1384_v35 = vpack.c.bf16 %v312_v29, %v306_v27  ;;  %v126_v37 = vld [vmem:[#allocation2 + $0x300] sm:$0xff] }
  0x29   :  { %1375 = vmatprep.subr.bf16.mxu0 %v1374_v4  ;;  %v325_v33 = vld [vmem:[#allocation2 + $0x938] sm:$0xff]  ;;  %v1322_v36 = vpack.c.bf16 %v133_v31, %v127_v30  ;;  %v132_v38 = vld [vmem:[#allocation2 + $0x330] sm:$0xff]  ;;  %v318_v39 = vld [vmem:[#allocation2 + $0x900] sm:$0xff] }
  0x2a   :  { %v1386_v40 = vpack.c.bf16 %v325_v33, %v319_v32  ;;  %v324_v41 = vld [vmem:[#allocation2 + $0x930] sm:$0xff]  ;;  %v139_v42 = vld [vmem:[#allocation2 + $0x368] sm:$0xff]  ;;  %v145_v43 = vld [vmem:[#allocation2 + $0x398] sm:$0xff]  ;;  %v1324_v46 = vpack.c.bf16 %v132_v38, %v126_v37 }
  0x2b   :  { %1313 = vmatpush1.bf16.msra.mxu1 %v1312_v10  ;;  %v331_v44 = vld [vmem:[#allocation2 + $0x968] sm:$0xff]  ;;  %v337_v45 = vld [vmem:[#allocation2 + $0x998] sm:$0xff]  ;;  %v1388_v47 = vpack.c.bf16 %v324_v41, %v318_v39  ;;  %v1326_v48 = vpack.c.bf16 %v145_v43, %v139_v42  ;;  %v138_v49 = vld [vmem:[#allocation2 + $0x360] sm:$0xff] }
  0x2c   :  { %1377 = vmatpush1.bf16.msra.mxu0 %v1376_v11  ;;  %1315 = vmatprep.subr.bf16.mxu1 %v1314_v12  ;;  %v144_v50 = vld [vmem:[#allocation2 + $0x390] sm:$0xff]  ;;  %v330_v51 = vld [vmem:[#allocation2 + $0x960] sm:$0xff]  ;;  %v1390_v52 = vpack.c.bf16 %v337_v45, %v331_v44  ;;  %v151_v54 = vld [vmem:[#allocation2 + $0x3c8] sm:$0xff] }
  0x2d   :  { %1379 = vmatprep.subr.bf16.mxu0 %v1378_v16  ;;  %v336_v53 = vld [vmem:[#allocation2 + $0x990] sm:$0xff]  ;;  %v157_v55 = vld [vmem:[#allocation2 + $0x3f8] sm:$0xff]  ;;  %v343_v56 = vld [vmem:[#allocation2 + $0x9c8] sm:$0xff]  ;;  %v1328_v58 = vpack.c.bf16 %v144_v50, %v138_v49 }
  0x2e   :  { %v349_v57 = vld [vmem:[#allocation2 + $0x9f8] sm:$0xff]  ;;  %v1392_v59 = vpack.c.bf16 %v336_v53, %v330_v51  ;;  %v1330_v60 = vpack.c.bf16 %v157_v55, %v151_v54  ;;  %v150_v61 = vld [vmem:[#allocation2 + $0x3c0] sm:$0xff]  ;;  %v156_v62 = vld [vmem:[#allocation2 + $0x3f0] sm:$0xff] }
  0x2f   :  { %1317 = vmatpush1.bf16.msra.mxu1 %v1316_v22  ;;  %v342_v63 = vld [vmem:[#allocation2 + $0x9c0] sm:$0xff]  ;;  %v1394_v0 = vpack.c.bf16 %v349_v57, %v343_v56  ;;  %v348_v1 = vld [vmem:[#allocation2 + $0x9f0] sm:$0xff]  ;;  %v163_v2 = vld [vmem:[#allocation2 + $0x428] sm:$0xff]  ;;  %v1332_v6 = vpack.c.bf16 %v156_v62, %v150_v61 }
  0x30   :  { %1381 = vmatpush1.bf16.msra.mxu0 %v1380_v23  ;;  %1319 = vmatprep.subr.bf16.mxu1 %v1318_v24  ;;  %v169_v3 = vld [vmem:[#allocation2 + $0x458] sm:$0xff]  ;;  %v355_v4 = vld [vmem:[#allocation2 + $0xa28] sm:$0xff]  ;;  %v162_v7 = vld [vmem:[#allocation2 + $0x420] sm:$0xff]  ;;  %v1396_v8 = vpack.c.bf16 %v348_v1, %v342_v63 }
  0x31   :  { %1383 = vmatprep.subr.bf16.mxu0 %v1382_v28  ;;  %v361_v5 = vld [vmem:[#allocation2 + $0xa58] sm:$0xff]  ;;  %v1334_v9 = vpack.c.bf16 %v169_v3, %v163_v2  ;;  %v168_v10 = vld [vmem:[#allocation2 + $0x450] sm:$0xff]  ;;  %v354_v11 = vld [vmem:[#allocation2 + $0xa20] sm:$0xff] }
  0x32   :  { %v360_v12 = vld [vmem:[#allocation2 + $0xa50] sm:$0xff]  ;;  %v1398_v13 = vpack.c.bf16 %v361_v5, %v355_v4  ;;  %v175_v14 = vld [vmem:[#allocation2 + $0x488] sm:$0xff]  ;;  %v181_v15 = vld [vmem:[#allocation2 + $0x4b8] sm:$0xff]  ;;  %v1336_v21 = vpack.c.bf16 %v168_v10, %v162_v7 }
  0x33   :  { %1321 = vmatpush1.bf16.msra.mxu1 %v1320_v34  ;;  %v1949_v16 = vld [vmem:[%s2033_s0] sm:$0xff]  ;;  %v367_v17 = vld [vmem:[#allocation2 + $0xa88] sm:$0xff]  ;;  %v373_v18 = vld [vmem:[#allocation2 + $0xab8] sm:$0xff]  ;;  %v1400_v23 = vpack.c.bf16 %v360_v12, %v354_v11  ;;  %v1338_v24 = vpack.c.bf16 %v181_v15, %v175_v14 }
  0x34   :  { %1385 = vmatpush1.bf16.msra.mxu0 %v1384_v35  ;;  %1323 = vmatprep.subr.bf16.mxu1 %v1322_v36  ;;  %v1953_v19 = vcombine.high %v1949_v16, %v1949_v16  ;;  %v1958_v20 = vld [vmem:[%s2033_s0 + $0x8] sm:$0xff]  ;;  %v174_v25 = vld [vmem:[#allocation2 + $0x480] sm:$0xff]  ;;  %v180_v26 = vld [vmem:[#allocation2 + $0x4b0] sm:$0xff]  ;;  %v1402_v28 = vpack.c.bf16 %v373_v18, %v367_v17 }
  0x35   :  { %1387 = vmatprep.subr.bf16.mxu0 %v1386_v40  ;;  %v1962_v22 = vcombine.high %v1958_v20, %v1958_v20  ;;  %v366_v27 = vld [vmem:[#allocation2 + $0xa80] sm:$0xff]  ;;  %v372_v29 = vld [vmem:[#allocation2 + $0xab0] sm:$0xff]  ;;  %v187_v30 = vld [vmem:[#allocation2 + $0x4e8] sm:$0xff]  ;;  %v1340_v34 = vpack.c.bf16 %v180_v26, %v174_v25 }
  0x36   :  { %v193_v31 = vld [vmem:[#allocation2 + $0x518] sm:$0xff]  ;;  %679 = vmatprep.mubr.f32.mxu1 %v1953_v19  ;;  %v379_v32 = vld [vmem:[#allocation2 + $0xae8] sm:$0xff]  ;;  %v1404_v35 = vpack.c.bf16 %v372_v29, %v366_v27  ;;  %v186_v37 = vld [vmem:[#allocation2 + $0x4e0] sm:$0xff] }
  0x37   :  { %1325 = vmatpush1.bf16.msra.mxu1 %v1324_v46  ;;  %v385_v33 = vld [vmem:[#allocation2 + $0xb18] sm:$0xff]  ;;  %750 = vmatprep.mubr.f32.mxu0 %v1962_v22  ;;  %v1342_v36 = vpack.c.bf16 %v193_v31, %v187_v30  ;;  %v192_v38 = vld [vmem:[#allocation2 + $0x510] sm:$0xff]  ;;  %v378_v39 = vld [vmem:[#allocation2 + $0xae0] sm:$0xff] }
  0x38   :  { %1389 = vmatpush1.bf16.msra.mxu0 %v1388_v47  ;;  %1327 = vmatprep.subr.bf16.mxu1 %v1326_v48  ;;  %v1406_v40 = vpack.c.bf16 %v385_v33, %v379_v32  ;;  %v384_v41 = vld [vmem:[#allocation2 + $0xb10] sm:$0xff]  ;;  %v199_v42 = vld [vmem:[#allocation2 + $0x548] sm:$0xff]  ;;  %v205_v43 = vld [vmem:[#allocation2 + $0x578] sm:$0xff]  ;;  %v1344_v46 = vpack.c.bf16 %v192_v38, %v186_v37 }
  0x39   :  { %1391 = vmatprep.subr.bf16.mxu0 %v1390_v52  ;;  %v391_v44 = vld [vmem:[#allocation2 + $0xb48] sm:$0xff]  ;;  %v397_v45 = vld [vmem:[#allocation2 + $0xb78] sm:$0xff]  ;;  %v1408_v47 = vpack.c.bf16 %v384_v41, %v378_v39  ;;  %v1346_v48 = vpack.c.bf16 %v205_v43, %v199_v42  ;;  %v198_v49 = vld [vmem:[#allocation2 + $0x540] sm:$0xff] }
  0x3a   :  { %v204_v50 = vld [vmem:[#allocation2 + $0x570] sm:$0xff]  ;;  %v390_v51 = vld [vmem:[#allocation2 + $0xb40] sm:$0xff]  ;;  %v1410_v52 = vpack.c.bf16 %v397_v45, %v391_v44  ;;  %v211_v54 = vld [vmem:[#allocation2 + $0x5a8] sm:$0xff] }
  0x3b   :  { %1329 = vmatpush1.bf16.msra.mxu1 %v1328_v58  ;;  %v396_v53 = vld [vmem:[#allocation2 + $0xb70] sm:$0xff]  ;;  %v217_v55 = vld [vmem:[#allocation2 + $0x5d8] sm:$0xff]  ;;  %v403_v56 = vld [vmem:[#allocation2 + $0xba8] sm:$0xff]  ;;  %v1348_v58 = vpack.c.bf16 %v204_v50, %v198_v49 }
  0x3c   :  { %1393 = vmatpush1.bf16.msra.mxu0 %v1392_v59  ;;  %1331 = vmatprep.subr.bf16.mxu1 %v1330_v60  ;;  %v409_v57 = vld [vmem:[#allocation2 + $0xbd8] sm:$0xff]  ;;  %v1412_v59 = vpack.c.bf16 %v396_v53, %v390_v51  ;;  %v1350_v60 = vpack.c.bf16 %v217_v55, %v211_v54  ;;  %v210_v61 = vld [vmem:[#allocation2 + $0x5a0] sm:$0xff]  ;;  %v216_v62 = vld [vmem:[#allocation2 + $0x5d0] sm:$0xff] }
  0x3d   :  { %1395 = vmatprep.subr.bf16.mxu0 %v1394_v0  ;;  %v402_v63 = vld [vmem:[#allocation2 + $0xba0] sm:$0xff]  ;;  %v1414_v0 = vpack.c.bf16 %v409_v57, %v403_v56  ;;  %v408_v1 = vld [vmem:[#allocation2 + $0xbd0] sm:$0xff]  ;;  %v33_v2 = vld [vmem:[#allocation2 + $0x18] sm:$0xff] }
  0x3e   :  { %v39_v3 = vld [vmem:[#allocation2 + $0x48] sm:$0xff]  ;;  %v421_v5 = vld [vmem:[#allocation2 + $0xc38] sm:$0xff]  ;;  %v1416_v7 = vpack.c.bf16 %v408_v1, %v402_v63  ;;  %v32_v10 = vld [vmem:[#allocation2 + $0x10] sm:$0xff] }
  0x3f   :  { %1333 = vmatpush1.bf16.msra.mxu1 %v1332_v6  ;;  %v415_v4 = vld [vmem:[#allocation2 + $0xc08] sm:$0xff]  ;;  %v1352_v6 = vpack.c.bf16 %v216_v62, %v210_v61  ;;  %v38_v11 = vld [vmem:[#allocation2 + $0x40] sm:$0xff]  ;;  %v45_v14 = vld [vmem:[#allocation2 + $0x78] sm:$0xff] }
  0x40   :  { %1397 = vmatpush1.bf16.msra.mxu0 %v1396_v8  ;;  %1335 = vmatprep.subr.bf16.mxu1 %v1334_v9  ;;  %v1482_v8 = vpack.c.bf16 %v39_v3, %v33_v2  ;;  %v414_v9 = vld [vmem:[#allocation2 + $0xc00] sm:$0xff]  ;;  %v1418_v12 = vpack.c.bf16 %v421_v5, %v415_v4  ;;  %v51_v15 = vld [vmem:[#allocation2 + $0xa8] sm:$0xff]  ;;  %v433_v18 = vld [vmem:[#allocation2 + $0xc98] sm:$0xff] }
  0x41   :  { %1399 = vmatprep.subr.bf16.mxu0 %v1398_v13  ;;  %v420_v13 = vld [vmem:[#allocation2 + $0xc30] sm:$0xff]  ;;  %v427_v17 = vld [vmem:[#allocation2 + $0xc68] sm:$0xff]  ;;  %v426_v25 = vld [vmem:[#allocation2 + $0xc60] sm:$0xff] }
  0x42   :  { %v44_v26 = vld [vmem:[#allocation2 + $0x70] sm:$0xff]  ;;  %v50_v27 = vld [vmem:[#allocation2 + $0xa0] sm:$0xff]  ;;  %v57_v30 = vld [vmem:[#allocation2 + $0xd8] sm:$0xff] }
  0x43   :  { %1337 = vmatpush1.bf16.msra.mxu1 %v1336_v21  ;;  %v1484_v21 = vpack.c.bf16 %v38_v11, %v32_v10  ;;  %v432_v29 = vld [vmem:[#allocation2 + $0xc90] sm:$0xff]  ;;  %v63_v31 = vld [vmem:[#allocation2 + $0x108] sm:$0xff]  ;;  %v445_v33 = vld [vmem:[#allocation2 + $0xcf8] sm:$0xff] }
  0x44   :  { %1401 = vmatpush1.bf16.msra.mxu0 %v1400_v23  ;;  %1339 = vmatprep.subr.bf16.mxu1 %v1338_v24  ;;  %v1420_v23 = vpack.c.bf16 %v420_v13, %v414_v9  ;;  %v1486_v24 = vpack.c.bf16 %v51_v15, %v45_v14  ;;  %v439_v32 = vld [vmem:[#allocation2 + $0xcc8] sm:$0xff]  ;;  %v438_v37 = vld [vmem:[#allocation2 + $0xcc0] sm:$0xff]  ;;  %v56_v38 = vld [vmem:[#allocation2 + $0xd0] sm:$0xff] }
  0x45   :  { %1403 = vmatprep.subr.bf16.mxu0 %v1402_v28  ;;  %v1422_v28 = vpack.c.bf16 %v433_v18, %v427_v17  ;;  %v62_v39 = vld [vmem:[#allocation2 + $0x100] sm:$0xff]  ;;  %v444_v41 = vld [vmem:[#allocation2 + $0xcf0] sm:$0xff]  ;;  %v69_v42 = vld [vmem:[#allocation2 + $0x138] sm:$0xff] }
  0x46   :  { %v75_v43 = vld [vmem:[#allocation2 + $0x168] sm:$0xff]  ;;  %v457_v45 = vld [vmem:[#allocation2 + $0xd58] sm:$0xff]  ;;  %v68_v49 = vld [vmem:[#allocation2 + $0x130] sm:$0xff] }
  0x47   :  { %1341 = vmatpush1.bf16.msra.mxu1 %v1340_v34  ;;  %v1488_v34 = vpack.c.bf16 %v50_v27, %v44_v26  ;;  %v451_v44 = vld [vmem:[#allocation2 + $0xd28] sm:$0xff]  ;;  %v74_v50 = vld [vmem:[#allocation2 + $0x160] sm:$0xff]  ;;  %v81_v53 = vld [vmem:[#allocation2 + $0x198] sm:$0xff] }
  0x48   :  { %1405 = vmatpush1.bf16.msra.mxu0 %v1404_v35  ;;  %1343 = vmatprep.subr.bf16.mxu1 %v1342_v36  ;;  %v1424_v35 = vpack.c.bf16 %v432_v29, %v426_v25  ;;  %v1490_v36 = vpack.c.bf16 %v63_v31, %v57_v30  ;;  %v1430_v51 = vpack.c.bf16 %v457_v45, %v451_v44  ;;  %v87_v54 = vld [vmem:[#allocation2 + $0x1c8] sm:$0xff]  ;;  %v469_v56 = vld [vmem:[#allocation2 + $0xdb8] sm:$0xff]  ;;  %v80_v61 = vld [vmem:[#allocation2 + $0x190] sm:$0xff] }
  0x49   :  { %1407 = vmatprep.subr.bf16.mxu0 %v1406_v40  ;;  %v1426_v40 = vpack.c.bf16 %v445_v33, %v439_v32  ;;  %v463_v55 = vld [vmem:[#allocation2 + $0xd88] sm:$0xff]  ;;  %v1496_v57 = vpack.c.bf16 %v74_v50, %v68_v49  ;;  %v86_v62 = vld [vmem:[#allocation2 + $0x1c0] sm:$0xff]  ;;  %v93_v1 = vld [vmem:[#allocation2 + $0x1f8] sm:$0xff] }
  0x4a   :  { %v1434_v63 = vpack.c.bf16 %v469_v56, %v463_v55  ;;  %v99_v2 = vld [vmem:[#allocation2 + $0x228] sm:$0xff]  ;;  %v481_v4 = vld [vmem:[#allocation2 + $0xe18] sm:$0xff]  ;;  %v1500_v5 = vpack.c.bf16 %v86_v62, %v80_v61  ;;  %v92_v9 = vld [vmem:[#allocation2 + $0x1f0] sm:$0xff] }
  0x4b   :  { %1345 = vmatpush1.bf16.msra.mxu1 %v1344_v46  ;;  %v1428_v46 = vpack.c.bf16 %v444_v41, %v438_v37  ;;  %v475_v3 = vld [vmem:[#allocation2 + $0xde8] sm:$0xff]  ;;  %v98_v10 = vld [vmem:[#allocation2 + $0x220] sm:$0xff]  ;;  %v105_v13 = vld [vmem:[#allocation2 + $0x258] sm:$0xff] }
  0x4c   :  { %1409 = vmatpush1.bf16.msra.mxu0 %v1408_v47  ;;  %1347 = vmatprep.subr.bf16.mxu1 %v1346_v48  ;;  %v1494_v47 = vpack.c.bf16 %v75_v43, %v69_v42  ;;  %v450_v48 = vld [vmem:[#allocation2 + $0xd20] sm:$0xff]  ;;  %v1438_v11 = vpack.c.bf16 %v481_v4, %v475_v3  ;;  %v111_v14 = vld [vmem:[#allocation2 + $0x288] sm:$0xff]  ;;  %v493_v17 = vld [vmem:[#allocation2 + $0xe78] sm:$0xff]  ;;  %v1504_v18 = vpack.c.bf16 %v98_v10, %v92_v9 }
  0x4d   :  { %1411 = vmatprep.subr.bf16.mxu0 %v1410_v52  ;;  %v456_v52 = vld [vmem:[#allocation2 + $0xd50] sm:$0xff]  ;;  %v487_v15 = vld [vmem:[#allocation2 + $0xe48] sm:$0xff]  ;;  %v110_v27 = vld [vmem:[#allocation2 + $0x280] sm:$0xff] }
  0x4e   :  { %v492_v25 = vld [vmem:[#allocation2 + $0xe70] sm:$0xff]  ;;  %v117_v29 = vld [vmem:[#allocation2 + $0x2b8] sm:$0xff]  ;;  %v123_v30 = vld [vmem:[#allocation2 + $0x2e8] sm:$0xff] }
  0x4f   :  { %1349 = vmatpush1.bf16.msra.mxu1 %v1348_v58  ;;  %v1432_v58 = vpack.c.bf16 %v456_v52, %v450_v48  ;;  %v104_v26 = vld [vmem:[#allocation2 + $0x250] sm:$0xff]  ;;  %v499_v32 = vld [vmem:[#allocation2 + $0xea8] sm:$0xff]  ;;  %v505_v33 = vld [vmem:[#allocation2 + $0xed8] sm:$0xff]  ;;  %v1510_v37 = vpack.c.bf16 %v123_v30, %v117_v29 }
  0x50   :  { %1413 = vmatpush1.bf16.msra.mxu0 %v1412_v59  ;;  %1351 = vmatprep.subr.bf16.mxu1 %v1350_v60  ;;  %v1498_v59 = vpack.c.bf16 %v87_v54, %v81_v53  ;;  %v462_v60 = vld [vmem:[#allocation2 + $0xd80] sm:$0xff]  ;;  %v1972_v31 = vld [vmem:[%s2033_s0 + $0x10] sm:$0xff]  ;;  %v1446_v41 = vpack.c.bf16 %v505_v33, %v499_v32  ;;  %v129_v43 = vld [vmem:[#allocation2 + $0x318] sm:$0xff] }
  0x51   :  { %1415 = vmatprep.subr.bf16.mxu0 %v1414_v0  ;;  %v468_v0 = vld [vmem:[#allocation2 + $0xdb0] sm:$0xff]  ;;  %v135_v44 = vld [vmem:[#allocation2 + $0x348] sm:$0xff]  ;;  %v510_v49 = vld [vmem:[#allocation2 + $0xf00] sm:$0xff] }
  0x52   :  { %v504_v42 = vld [vmem:[#allocation2 + $0xed0] sm:$0xff]  ;;  %v511_v45 = vld [vmem:[#allocation2 + $0xf08] sm:$0xff]  ;;  %v1514_v48 = vpack.c.bf16 %v135_v44, %v129_v43  ;;  %v141_v54 = vld [vmem:[#allocation2 + $0x378] sm:$0xff] }
  0x53   :  { %1353 = vmatpush1.bf16.msra.mxu1 %v1352_v6  ;;  %v1436_v6 = vpack.c.bf16 %v468_v0, %v462_v60  ;;  %v128_v50 = vld [vmem:[#allocation2 + $0x310] sm:$0xff]  ;;  %v147_v55 = vld [vmem:[#allocation2 + $0x3a8] sm:$0xff]  ;;  %v522_v61 = vld [vmem:[#allocation2 + $0xf60] sm:$0xff] }
  0x54   :  { %1417 = vmatpush1.bf16.msra.mxu0 %v1416_v7  ;;  %1483 = vmatprep.subr.bf16.mxu1 %v1482_v8  ;;  %v1502_v7 = vpack.c.bf16 %v99_v2, %v93_v1  ;;  %v474_v8 = vld [vmem:[#allocation2 + $0xde0] sm:$0xff]  ;;  %v516_v53 = vld [vmem:[#allocation2 + $0xf30] sm:$0xff]  ;;  %v523_v56 = vld [vmem:[#allocation2 + $0xf68] sm:$0xff]  ;;  %v1518_v60 = vpack.c.bf16 %v147_v55, %v141_v54 }
  0x55   :  { %1419 = vmatprep.subr.bf16.mxu0 %v1418_v12  ;;  %v480_v12 = vld [vmem:[#allocation2 + $0xe10] sm:$0xff]  ;;  %v153_v2 = vld [vmem:[#allocation2 + $0x3d8] sm:$0xff]  ;;  %v159_v3 = vld [vmem:[#allocation2 + $0x408] sm:$0xff] }
  0x56   :  { %680 = vmatmul.mubr.f32.vlgmr.msra.gmra.mrb[0].mxu1 %v1949_v16  ;;  %v140_v62 = vld [vmem:[#allocation2 + $0x370] sm:$0xff]  ;;  %v535_v4 = vld [vmem:[#allocation2 + $0xfc8] sm:$0xff]  ;;  %v534_v9 = vld [vmem:[#allocation2 + $0xfc0] sm:$0xff] }
  0x57   :  { %751 = vmatmul.mubr.f32.vlgmr.msra.gmra.mrb[0].mxu0 %v1958_v20  ;;  %1485 = vmatpush1.bf16.msra.mxu1 %v1484_v21  ;;  %v1492_v20 = vpack.c.bf16 %v62_v39, %v56_v38  ;;  %v486_v21 = vld [vmem:[#allocation2 + $0xe40] sm:$0xff]  ;;  %v116_v39 = vld [vmem:[#allocation2 + $0x2b0] sm:$0xff]  ;;  %v177_v30 = vld [vmem:[#allocation2 + $0x498] sm:$0xff] }
  0x58   :  { %1421 = vmatpush1.bf16.msra.mxu0 %v1420_v23  ;;  %1487 = vmatprep.subr.bf16.mxu1 %v1486_v24  ;;  %v1440_v23 = vpack.c.bf16 %v480_v12, %v474_v8  ;;  %v1506_v24 = vpack.c.bf16 %v111_v14, %v105_v13  ;;  %v498_v38 = vld [vmem:[#allocation2 + $0xea0] sm:$0xff]  ;;  %v528_v1 = vld [vmem:[#allocation2 + $0xf90] sm:$0xff]  ;;  %v1522_v8 = vpack.c.bf16 %v159_v3, %v153_v2  ;;  %v165_v14 = vld [vmem:[#allocation2 + $0x438] sm:$0xff] }
  0x59   :  { %1423 = vmatprep.subr.bf16.mxu0 %v1422_v28  ;;  %892 = vmatprep.mubr.f32.mxu1 %v1953_v19  ;;  %v1442_v28 = vpack.c.bf16 %v493_v17, %v487_v15  ;;  %v152_v10 = vld [vmem:[#allocation2 + $0x3d0] sm:$0xff]  ;;  %v171_v15 = vld [vmem:[#allocation2 + $0x468] sm:$0xff]  ;;  %v189_v44 = vld [vmem:[#allocation2 + $0x4f8] sm:$0xff] }
  0x5a   :  { %v540_v13 = vld [vmem:[#allocation2 + $0xff0] sm:$0xff]  ;;  %v547_v17 = vld [vmem:[#allocation2 + $0x1028] sm:$0xff]  ;;  %v201_v55 = vld [vmem:[#allocation2 + $0x558] sm:$0xff] }
  0x5b   :  { %1489 = vmatpush1.bf16.msra.mxu1 %v1488_v34  ;;  %v1976_v34 = vcombine.high %v1972_v31, %v1972_v31  ;;  %v552_v29 = vld [vmem:[#allocation2 + $0x1050] sm:$0xff]  ;;  %v183_v32 = vld [vmem:[#allocation2 + $0x4c8] sm:$0xff]  ;;  %v213_v3 = vld [vmem:[#allocation2 + $0x5b8] sm:$0xff] }
  0x5c   :  { %1425 = vmatpush1.bf16.msra.mxu0 %v1424_v35  ;;  %1491 = vmatprep.subr.bf16.mxu1 %v1490_v36  ;;  %v1508_v35 = vpack.c.bf16 %v110_v27, %v104_v26  ;;  %v1444_v36 = vpack.c.bf16 %v492_v25, %v486_v21  ;;  %v546_v25 = vld [vmem:[#allocation2 + $0x1020] sm:$0xff]  ;;  %v164_v26 = vld [vmem:[#allocation2 + $0x430] sm:$0xff]  ;;  %v559_v33 = vld [vmem:[#allocation2 + $0x1088] sm:$0xff] }
  0x5d   :  { %1427 = vmatprep.subr.bf16.mxu0 %v1426_v40  ;;  %v122_v40 = vld [vmem:[#allocation2 + $0x2e0] sm:$0xff]  ;;  %821 = vmatprep.mubr.f32.mxu0 %v1976_v34  ;;  %v564_v43 = vld [vmem:[#allocation2 + $0x10b0] sm:$0xff] }
  0x5e   :  { %v170_v27 = vld [vmem:[#allocation2 + $0x460] sm:$0xff]  ;;  %v576_v54 = vld [vmem:[#allocation2 + $0x1110] sm:$0xff] }
  0x5f   :  { %1493 = vmatpush1.bf16.msra.mxu1 %v1492_v20  ;;  %v517_v20 = vld [vmem:[#allocation2 + $0xf38] sm:$0xff]  ;;  %v588_v2 = vld [vmem:[#allocation2 + $0x1170] sm:$0xff] }
  0x60   :  { %1429 = vmatpush1.bf16.msra.mxu0 %v1428_v46  ;;  %1495 = vmatprep.subr.bf16.mxu1 %v1494_v47  ;;  %v1512_v46 = vpack.c.bf16 %v122_v40, %v116_v39  ;;  %v1448_v47 = vpack.c.bf16 %v504_v42, %v498_v38  ;;  %v1450_v52 = vpack.c.bf16 %v517_v20, %v511_v45  ;;  %v558_v39 = vld [vmem:[#allocation2 + $0x1080] sm:$0xff]  ;;  %v176_v40 = vld [vmem:[#allocation2 + $0x490] sm:$0xff]  ;;  %v195_v45 = vld [vmem:[#allocation2 + $0x528] sm:$0xff] }
  0x61   :  { %1431 = vmatprep.subr.bf16.mxu0 %v1430_v51  ;;  %v134_v51 = vld [vmem:[#allocation2 + $0x340] sm:$0xff]  ;;  %v1530_v38 = vpack.c.bf16 %v183_v32, %v177_v30  ;;  %v571_v20 = vld [vmem:[#allocation2 + $0x10e8] sm:$0xff]  ;;  %v40_v30 = vld [vmem:[#allocation2 + $0x50] sm:$0xff] }
  0x62   :  { %v237_v32 = vld [vmem:[#allocation2 + $0x678] sm:$0xff] }
  0x63   :  { %1497 = vmatpush1.bf16.msra.mxu1 %v1496_v57  ;;  %v529_v57 = vld [vmem:[#allocation2 + $0xf98] sm:$0xff] }
  0x64   :  { %1433 = vmatpush1.bf16.msra.mxu0 %v1432_v58  ;;  %1499 = vmatprep.subr.bf16.mxu1 %v1498_v59  ;;  %v1516_v58 = vpack.c.bf16 %v134_v51, %v128_v50  ;;  %v1452_v59 = vpack.c.bf16 %v516_v53, %v510_v49  ;;  %v1454_v0 = vpack.c.bf16 %v529_v57, %v523_v56  ;;  %v570_v50 = vld [vmem:[#allocation2 + $0x10e0] sm:$0xff]  ;;  %v188_v51 = vld [vmem:[#allocation2 + $0x4f0] sm:$0xff]  ;;  %v207_v56 = vld [vmem:[#allocation2 + $0x588] sm:$0xff] }
  0x65   :  { %1435 = vmatprep.subr.bf16.mxu0 %v1434_v63  ;;  %v146_v63 = vld [vmem:[#allocation2 + $0x3a0] sm:$0xff]  ;;  %v1534_v49 = vpack.c.bf16 %v195_v45, %v189_v44  ;;  %v583_v57 = vld [vmem:[#allocation2 + $0x1148] sm:$0xff]  ;;  %v52_v44 = vld [vmem:[#allocation2 + $0xb0] sm:$0xff] }
  0x66   :  { %v249_v45 = vld [vmem:[#allocation2 + $0x6d8] sm:$0xff] }
  0x67   :  { %1501 = vmatpush1.bf16.msra.mxu1 %v1500_v5  ;;  %v541_v5 = vld [vmem:[#allocation2 + $0xff8] sm:$0xff] }
  0x68   :  { %1437 = vmatpush1.bf16.msra.mxu0 %v1436_v6  ;;  %1503 = vmatprep.subr.bf16.mxu1 %v1502_v7  ;;  %v1520_v6 = vpack.c.bf16 %v146_v63, %v140_v62  ;;  %v1456_v7 = vpack.c.bf16 %v528_v1, %v522_v61  ;;  %v1458_v12 = vpack.c.bf16 %v541_v5, %v535_v4  ;;  %v582_v62 = vld [vmem:[#allocation2 + $0x1140] sm:$0xff]  ;;  %v200_v63 = vld [vmem:[#allocation2 + $0x550] sm:$0xff]  ;;  %v219_v4 = vld [vmem:[#allocation2 + $0x5e8] sm:$0xff] }
  0x69   :  { %1439 = vmatprep.subr.bf16.mxu0 %v1438_v11  ;;  %v158_v11 = vld [vmem:[#allocation2 + $0x400] sm:$0xff]  ;;  %v1538_v61 = vpack.c.bf16 %v207_v56, %v201_v55  ;;  %v595_v5 = vld [vmem:[#allocation2 + $0x11a8] sm:$0xff]  ;;  %v64_v55 = vld [vmem:[#allocation2 + $0x110] sm:$0xff] }
  0x6a   :  { %v1524_v21 = vpack.c.bf16 %v158_v11, %v152_v10  ;;  %v594_v10 = vld [vmem:[#allocation2 + $0x11a0] sm:$0xff]  ;;  %v212_v11 = vld [vmem:[#allocation2 + $0x5b0] sm:$0xff]  ;;  %v261_v56 = vld [vmem:[#allocation2 + $0x738] sm:$0xff] }
  0x6b   :  { %1505 = vmatpush1.bf16.msra.mxu1 %v1504_v18  ;;  %v553_v18 = vld [vmem:[#allocation2 + $0x1058] sm:$0xff] }
  0x6c   :  { %1441 = vmatpush1.bf16.msra.mxu0 %v1440_v23  ;;  %1507 = vmatprep.subr.bf16.mxu1 %v1506_v24  ;;  %v1460_v23 = vpack.c.bf16 %v540_v13, %v534_v9  ;;  %v1526_v24 = vpack.c.bf16 %v171_v15, %v165_v14  ;;  %v1542_v9 = vpack.c.bf16 %v219_v4, %v213_v3  ;;  %v600_v14 = vld [vmem:[#allocation2 + $0x11d0] sm:$0xff]  ;;  %v225_v15 = vld [vmem:[#allocation2 + $0x618] sm:$0xff]  ;;  %v279_v3 = vld [vmem:[#allocation2 + $0x7c8] sm:$0xff] }
  0x6d   :  { %1443 = vmatprep.subr.bf16.mxu0 %v1442_v28  ;;  %v1462_v28 = vpack.c.bf16 %v553_v18, %v547_v17  ;;  %v231_v17 = vld [vmem:[#allocation2 + $0x648] sm:$0xff] }
  0x6e   :  { %v35_v18 = vld [vmem:[#allocation2 + $0x28] sm:$0xff] }
  0x6f   :  { %1509 = vmatpush1.bf16.msra.mxu1 %v1508_v35  ;;  %v565_v35 = vld [vmem:[#allocation2 + $0x10b8] sm:$0xff]  ;;  %v83_v4 = vld [vmem:[#allocation2 + $0x1a8] sm:$0xff] }
  0x70   :  { %1445 = vmatpush1.bf16.msra.mxu0 %v1444_v36  ;;  %1511 = vmatprep.subr.bf16.mxu1 %v1510_v37  ;;  %v1528_v36 = vpack.c.bf16 %v170_v27, %v164_v26  ;;  %v1464_v37 = vpack.c.bf16 %v552_v29, %v546_v25  ;;  %v1466_v42 = vpack.c.bf16 %v565_v35, %v559_v33  ;;  %v224_v26 = vld [vmem:[#allocation2 + $0x610] sm:$0xff]  ;;  %v230_v27 = vld [vmem:[#allocation2 + $0x640] sm:$0xff]  ;;  %v243_v33 = vld [vmem:[#allocation2 + $0x6a8] sm:$0xff] }
  0x71   :  { %1447 = vmatprep.subr.bf16.mxu0 %v1446_v41  ;;  %v182_v41 = vld [vmem:[#allocation2 + $0x4c0] sm:$0xff]  ;;  %v1546_v25 = vpack.c.bf16 %v231_v17, %v225_v15  ;;  %v47_v35 = vld [vmem:[#allocation2 + $0x88] sm:$0xff]  ;;  %v101_v17 = vld [vmem:[#allocation2 + $0x238] sm:$0xff] }
  0x72   :  { %v95_v15 = vld [vmem:[#allocation2 + $0x208] sm:$0xff] }
  0x73   :  { %1513 = vmatpush1.bf16.msra.mxu1 %v1512_v46  ;;  %v577_v46 = vld [vmem:[#allocation2 + $0x1118] sm:$0xff] }
  0x74   :  { %1449 = vmatpush1.bf16.msra.mxu0 %v1448_v47  ;;  %1515 = vmatprep.subr.bf16.mxu1 %v1514_v48  ;;  %v1532_v47 = vpack.c.bf16 %v182_v41, %v176_v40  ;;  %v1468_v48 = vpack.c.bf16 %v564_v43, %v558_v39  ;;  %v1470_v53 = vpack.c.bf16 %v577_v46, %v571_v20  ;;  %v236_v40 = vld [vmem:[#allocation2 + $0x670] sm:$0xff]  ;;  %v242_v41 = vld [vmem:[#allocation2 + $0x6a0] sm:$0xff]  ;;  %v255_v20 = vld [vmem:[#allocation2 + $0x708] sm:$0xff] }
  0x75   :  { %1451 = vmatprep.subr.bf16.mxu0 %v1450_v52  ;;  %v194_v52 = vld [vmem:[#allocation2 + $0x520] sm:$0xff]  ;;  %v1550_v39 = vpack.c.bf16 %v243_v33, %v237_v32  ;;  %v59_v46 = vld [vmem:[#allocation2 + $0xe8] sm:$0xff]  ;;  %v113_v33 = vld [vmem:[#allocation2 + $0x298] sm:$0xff] }
  0x76   :  { %v107_v32 = vld [vmem:[#allocation2 + $0x268] sm:$0xff] }
  0x77   :  { %1517 = vmatpush1.bf16.msra.mxu1 %v1516_v58  ;;  %v589_v58 = vld [vmem:[#allocation2 + $0x1178] sm:$0xff] }
  0x78   :  { %1453 = vmatpush1.bf16.msra.mxu0 %v1452_v59  ;;  %1519 = vmatprep.subr.bf16.mxu1 %v1518_v60  ;;  %v1536_v59 = vpack.c.bf16 %v194_v52, %v188_v51  ;;  %v1472_v60 = vpack.c.bf16 %v576_v54, %v570_v50  ;;  %v1474_v1 = vpack.c.bf16 %v589_v58, %v583_v57  ;;  %v248_v51 = vld [vmem:[#allocation2 + $0x6d0] sm:$0xff]  ;;  %v254_v52 = vld [vmem:[#allocation2 + $0x700] sm:$0xff]  ;;  %v267_v57 = vld [vmem:[#allocation2 + $0x768] sm:$0xff] }
  0x79   :  { %1455 = vmatprep.subr.bf16.mxu0 %v1454_v0  ;;  %v206_v0 = vld [vmem:[#allocation2 + $0x580] sm:$0xff]  ;;  %v1554_v50 = vpack.c.bf16 %v255_v20, %v249_v45  ;;  %v77_v58 = vld [vmem:[#allocation2 + $0x178] sm:$0xff]  ;;  %v119_v45 = vld [vmem:[#allocation2 + $0x2c8] sm:$0xff] }
  0x7a   :  { %v125_v20 = vld [vmem:[#allocation2 + $0x2f8] sm:$0xff] }
  0x7b   :  { %1521 = vmatpush1.bf16.msra.mxu1 %v1520_v6  ;;  %v601_v6 = vld [vmem:[#allocation2 + $0x11d8] sm:$0xff] }
  0x7c   :  { %1457 = vmatpush1.bf16.msra.mxu0 %v1456_v7  ;;  %1523 = vmatprep.subr.bf16.mxu1 %v1522_v8  ;;  %v1540_v7 = vpack.c.bf16 %v206_v0, %v200_v63  ;;  %v1476_v8 = vpack.c.bf16 %v588_v2, %v582_v62  ;;  %v1478_v13 = vpack.c.bf16 %v601_v6, %v595_v5  ;;  %v266_v62 = vld [vmem:[#allocation2 + $0x760] sm:$0xff]  ;;  %v273_v2 = vld [vmem:[#allocation2 + $0x798] sm:$0xff] }
  0x7d   :  { %1459 = vmatprep.subr.bf16.mxu0 %v1458_v12  ;;  %v218_v12 = vld [vmem:[#allocation2 + $0x5e0] sm:$0xff]  ;;  %v89_v5 = vld [vmem:[#allocation2 + $0x1d8] sm:$0xff] }
  0x7e   :  { %v70_v63 = vld [vmem:[#allocation2 + $0x140] sm:$0xff] }
  0x7f   :  { %1525 = vmatpush1.bf16.msra.mxu1 %v1524_v21  ;;  %v41_v21 = vld [vmem:[#allocation2 + $0x58] sm:$0xff] }
  0x80   :  { %1461 = vmatpush1.bf16.msra.mxu0 %v1460_v23  ;;  %1527 = vmatprep.subr.bf16.mxu1 %v1526_v24  ;;  %v1544_v23 = vpack.c.bf16 %v218_v12, %v212_v11  ;;  %v1480_v24 = vpack.c.bf16 %v600_v14, %v594_v10  ;;  %v1674_v29 = vpack.c.bf16 %v41_v21, %v35_v18  ;;  %v82_v10 = vld [vmem:[#allocation2 + $0x1a0] sm:$0xff]  ;;  %v88_v12 = vld [vmem:[#allocation2 + $0x1d0] sm:$0xff]  ;;  %v291_v14 = vld [vmem:[#allocation2 + $0x828] sm:$0xff] }
  0x81   :  { %1463 = vmatprep.subr.bf16.mxu0 %v1462_v28  ;;  %v34_v28 = vld [vmem:[#allocation2 + $0x20] sm:$0xff]  ;;  %v1690_v11 = vpack.c.bf16 %v89_v5, %v83_v4  ;;  %v1692_v21 = vpack.c.bf16 %v88_v12, %v82_v10  ;;  %v148_v10 = vld [vmem:[#allocation2 + $0x3b0] sm:$0xff]  ;;  %v351_v12 = vld [vmem:[#allocation2 + $0xa08] sm:$0xff] }
  0x83   :  { %1529 = vmatpush1.bf16.msra.mxu1 %v1528_v36  ;;  %v53_v36 = vld [vmem:[#allocation2 + $0xb8] sm:$0xff] }
  0x84   :  { %1465 = vmatpush1.bf16.msra.mxu0 %v1464_v37  ;;  %1531 = vmatprep.subr.bf16.mxu1 %v1530_v38  ;;  %v1548_v37 = vpack.c.bf16 %v230_v27, %v224_v26  ;;  %v1676_v38 = vpack.c.bf16 %v40_v30, %v34_v28  ;;  %v1678_v43 = vpack.c.bf16 %v53_v36, %v47_v35  ;;  %v94_v26 = vld [vmem:[#allocation2 + $0x200] sm:$0xff]  ;;  %v100_v28 = vld [vmem:[#allocation2 + $0x230] sm:$0xff]  ;;  %v303_v30 = vld [vmem:[#allocation2 + $0x888] sm:$0xff] }
  0x85   :  { %1467 = vmatprep.subr.bf16.mxu0 %v1466_v42  ;;  %v46_v42 = vld [vmem:[#allocation2 + $0x80] sm:$0xff]  ;;  %v1694_v27 = vpack.c.bf16 %v101_v17, %v95_v15  ;;  %v1696_v36 = vpack.c.bf16 %v100_v28, %v94_v26  ;;  %v160_v26 = vld [vmem:[#allocation2 + $0x410] sm:$0xff]  ;;  %v363_v28 = vld [vmem:[#allocation2 + $0xa68] sm:$0xff] }
  0x87   :  { %1533 = vmatpush1.bf16.msra.mxu1 %v1532_v47  ;;  %v65_v47 = vld [vmem:[#allocation2 + $0x118] sm:$0xff] }
  0x88   :  { %1469 = vmatpush1.bf16.msra.mxu0 %v1468_v48  ;;  %1535 = vmatprep.subr.bf16.mxu1 %v1534_v49  ;;  %v1552_v48 = vpack.c.bf16 %v242_v41, %v236_v40  ;;  %v1680_v49 = vpack.c.bf16 %v52_v44, %v46_v42  ;;  %v1682_v54 = vpack.c.bf16 %v65_v47, %v59_v46  ;;  %v106_v40 = vld [vmem:[#allocation2 + $0x260] sm:$0xff]  ;;  %v112_v42 = vld [vmem:[#allocation2 + $0x290] sm:$0xff]  ;;  %v315_v44 = vld [vmem:[#allocation2 + $0x8e8] sm:$0xff] }
  0x89   :  { %1471 = vmatprep.subr.bf16.mxu0 %v1470_v53  ;;  %v58_v53 = vld [vmem:[#allocation2 + $0xe0] sm:$0xff]  ;;  %v1698_v41 = vpack.c.bf16 %v113_v33, %v107_v32  ;;  %v1700_v47 = vpack.c.bf16 %v112_v42, %v106_v40  ;;  %v172_v40 = vld [vmem:[#allocation2 + $0x470] sm:$0xff]  ;;  %v375_v42 = vld [vmem:[#allocation2 + $0xac8] sm:$0xff] }
  0x8b   :  { %1537 = vmatpush1.bf16.msra.mxu1 %v1536_v59  ;;  %v1684_v59 = vpack.c.bf16 %v64_v55, %v58_v53  ;;  %v124_v53 = vld [vmem:[#allocation2 + $0x2f0] sm:$0xff]  ;;  %v327_v55 = vld [vmem:[#allocation2 + $0x948] sm:$0xff] }
  0x8c   :  { %1473 = vmatpush1.bf16.msra.mxu0 %v1472_v60  ;;  %1539 = vmatprep.subr.bf16.mxu1 %v1538_v61  ;;  %v1558_v60 = vpack.c.bf16 %v267_v57, %v261_v56  ;;  %v260_v61 = vld [vmem:[#allocation2 + $0x730] sm:$0xff]  ;;  %v131_v56 = vld [vmem:[#allocation2 + $0x328] sm:$0xff]  ;;  %v137_v57 = vld [vmem:[#allocation2 + $0x358] sm:$0xff] }
  0x8d   :  { %1475 = vmatprep.subr.bf16.mxu0 %v1474_v1  ;;  %v76_v1 = vld [vmem:[#allocation2 + $0x170] sm:$0xff]  ;;  %v1560_v6 = vpack.c.bf16 %v266_v62, %v260_v61  ;;  %v130_v61 = vld [vmem:[#allocation2 + $0x320] sm:$0xff]  ;;  %v1706_v62 = vpack.c.bf16 %v137_v57, %v131_v56 }
  0x8f   :  { %1541 = vmatpush1.bf16.msra.mxu1 %v1540_v7  ;;  %v1562_v7 = vpack.c.bf16 %v279_v3, %v273_v2  ;;  %v143_v2 = vld [vmem:[#allocation2 + $0x388] sm:$0xff]  ;;  %v149_v3 = vld [vmem:[#allocation2 + $0x3b8] sm:$0xff] }
  0x90   :  { %1477 = vmatpush1.bf16.msra.mxu0 %v1476_v8  ;;  %1543 = vmatprep.subr.bf16.mxu1 %v1542_v9  ;;  %v272_v8 = vld [vmem:[#allocation2 + $0x790] sm:$0xff]  ;;  %v278_v9 = vld [vmem:[#allocation2 + $0x7c0] sm:$0xff] }
  0x91   :  { %1479 = vmatprep.subr.bf16.mxu0 %v1478_v13  ;;  %v285_v13 = vld [vmem:[#allocation2 + $0x7f8] sm:$0xff]  ;;  %v1564_v18 = vpack.c.bf16 %v278_v9, %v272_v8  ;;  %v142_v8 = vld [vmem:[#allocation2 + $0x380] sm:$0xff]  ;;  %v1710_v9 = vpack.c.bf16 %v149_v3, %v143_v2 }
  0x92   :  { %v1712_v17 = vpack.c.bf16 %v148_v10, %v142_v8  ;;  %v208_v8 = vld [vmem:[#allocation2 + $0x590] sm:$0xff]  ;;  %v411_v10 = vld [vmem:[#allocation2 + $0xbe8] sm:$0xff] }
  0x93   :  { %1545 = vmatpush1.bf16.msra.mxu1 %v1544_v23  ;;  %v1566_v23 = vpack.c.bf16 %v291_v14, %v285_v13  ;;  %v155_v13 = vld [vmem:[#allocation2 + $0x3e8] sm:$0xff]  ;;  %v161_v14 = vld [vmem:[#allocation2 + $0x418] sm:$0xff] }
  0x94   :  { %1481 = vmatpush1.bf16.msra.mxu0 %v1480_v24  ;;  %1547 = vmatprep.subr.bf16.mxu1 %v1546_v25  ;;  %v284_v24 = vld [vmem:[#allocation2 + $0x7f0] sm:$0xff]  ;;  %v290_v25 = vld [vmem:[#allocation2 + $0x820] sm:$0xff] }
  0x95   :  { %1675 = vmatprep.subr.bf16.mxu0 %v1674_v29  ;;  %v297_v29 = vld [vmem:[#allocation2 + $0x858] sm:$0xff]  ;;  %v1568_v35 = vpack.c.bf16 %v290_v25, %v284_v24  ;;  %v154_v24 = vld [vmem:[#allocation2 + $0x3e0] sm:$0xff]  ;;  %v1714_v25 = vpack.c.bf16 %v161_v14, %v155_v13 }
  0x96   :  { %893 = vmatmul.mubr.f32.vlgmr.msra.gmra.mrb[2].mxu1 %v1949_v16  ;;  %v71_v16 = vld [vmem:[#allocation2 + $0x148] sm:$0xff]  ;;  %v1716_v33 = vpack.c.bf16 %v160_v26, %v154_v24  ;;  %v220_v24 = vld [vmem:[#allocation2 + $0x5f0] sm:$0xff] }
  0x97   :  { %822 = vmatmul.mubr.f32.vlgmr.msra.gmra.mrb[0].mxu0 %v1972_v31  ;;  %1549 = vmatpush1.bf16.msra.mxu1 %v1548_v37  ;;  %v1556_v31 = vpack.c.bf16 %v254_v52, %v248_v51  ;;  %v1686_v0 = vpack.c.bf16 %v77_v58, %v71_v16  ;;  %v1570_v37 = vpack.c.bf16 %v303_v30, %v297_v29  ;;  %v118_v51 = vld [vmem:[#allocation2 + $0x2c0] sm:$0xff]  ;;  %v167_v29 = vld [vmem:[#allocation2 + $0x448] sm:$0xff]  ;;  %v173_v30 = vld [vmem:[#allocation2 + $0x478] sm:$0xff] }
  0x98   :  { %1677 = vmatpush1.bf16.msra.mxu0 %v1676_v38  ;;  %1551 = vmatprep.subr.bf16.mxu1 %v1550_v39  ;;  %v296_v38 = vld [vmem:[#allocation2 + $0x850] sm:$0xff]  ;;  %v302_v39 = vld [vmem:[#allocation2 + $0x880] sm:$0xff]  ;;  %v1702_v52 = vpack.c.bf16 %v125_v20, %v119_v45  ;;  %v1704_v58 = vpack.c.bf16 %v124_v53, %v118_v51  ;;  %v387_v53 = vld [vmem:[#allocation2 + $0xb28] sm:$0xff] }
  0x99   :  { %1679 = vmatprep.subr.bf16.mxu0 %v1678_v43  ;;  %963 = vmatprep.mubr.f32.mxu1 %v1962_v22  ;;  %v309_v43 = vld [vmem:[#allocation2 + $0x8b8] sm:$0xff]  ;;  %v1572_v46 = vpack.c.bf16 %v302_v39, %v296_v38  ;;  %v166_v38 = vld [vmem:[#allocation2 + $0x440] sm:$0xff]  ;;  %v1718_v39 = vpack.c.bf16 %v173_v30, %v167_v29  ;;  %v184_v51 = vld [vmem:[#allocation2 + $0x4d0] sm:$0xff] }
  0x9a   :  { %1105 = vmatprep.mubr.f32.mxu0 %v1953_v19  ;;  %v1688_v19 = vpack.c.bf16 %v76_v1, %v70_v63  ;;  %v136_v63 = vld [vmem:[#allocation2 + $0x350] sm:$0xff]  ;;  %v339_v1 = vld [vmem:[#allocation2 + $0x9a8] sm:$0xff]  ;;  %v1720_v20 = vpack.c.bf16 %v172_v40, %v166_v38 }
  0x9b   :  { %1553 = vmatpush1.bf16.msra.mxu1 %v1552_v48  ;;  %v1574_v48 = vpack.c.bf16 %v315_v44, %v309_v43  ;;  %v1708_v5 = vpack.c.bf16 %v136_v63, %v130_v61  ;;  %v179_v43 = vld [vmem:[#allocation2 + $0x4a8] sm:$0xff]  ;;  %v185_v44 = vld [vmem:[#allocation2 + $0x4d8] sm:$0xff]  ;;  %v196_v61 = vld [vmem:[#allocation2 + $0x530] sm:$0xff] }
  0x9c   :  { %1681 = vmatpush1.bf16.msra.mxu0 %v1680_v49  ;;  %1555 = vmatprep.subr.bf16.mxu1 %v1554_v50  ;;  %v308_v49 = vld [vmem:[#allocation2 + $0x8b0] sm:$0xff]  ;;  %v314_v50 = vld [vmem:[#allocation2 + $0x8e0] sm:$0xff]  ;;  %v399_v63 = vld [vmem:[#allocation2 + $0xb88] sm:$0xff] }
  0x9d   :  { %1683 = vmatprep.subr.bf16.mxu0 %v1682_v54  ;;  %v321_v54 = vld [vmem:[#allocation2 + $0x918] sm:$0xff]  ;;  %v1576_v16 = vpack.c.bf16 %v314_v50, %v308_v49  ;;  %v178_v49 = vld [vmem:[#allocation2 + $0x4a0] sm:$0xff]  ;;  %v1722_v50 = vpack.c.bf16 %v185_v44, %v179_v43  ;;  %v423_v26 = vld [vmem:[#allocation2 + $0xc48] sm:$0xff] }
  0x9e   :  { %v1724_v57 = vpack.c.bf16 %v184_v51, %v178_v49  ;;  %v232_v38 = vld [vmem:[#allocation2 + $0x650] sm:$0xff]  ;;  %v435_v40 = vld [vmem:[#allocation2 + $0xca8] sm:$0xff] }
  0x9f   :  { %1557 = vmatpush1.bf16.msra.mxu1 %v1556_v31  ;;  %v1578_v31 = vpack.c.bf16 %v327_v55, %v321_v54  ;;  %v191_v54 = vld [vmem:[#allocation2 + $0x508] sm:$0xff]  ;;  %v197_v55 = vld [vmem:[#allocation2 + $0x538] sm:$0xff]  ;;  %v244_v49 = vld [vmem:[#allocation2 + $0x6b0] sm:$0xff] }
  0xa0   :  { %1685 = vmatpush1.bf16.msra.mxu0 %v1684_v59  ;;  %1559 = vmatprep.subr.bf16.mxu1 %v1558_v60  ;;  %v320_v59 = vld [vmem:[#allocation2 + $0x910] sm:$0xff]  ;;  %v326_v60 = vld [vmem:[#allocation2 + $0x940] sm:$0xff]  ;;  %v447_v51 = vld [vmem:[#allocation2 + $0xd08] sm:$0xff] }
  0xa1   :  { %1687 = vmatprep.subr.bf16.mxu0 %v1686_v0  ;;  %v333_v0 = vld [vmem:[#allocation2 + $0x978] sm:$0xff]  ;;  %v1580_v4 = vpack.c.bf16 %v326_v60, %v320_v59  ;;  %v190_v59 = vld [vmem:[#allocation2 + $0x500] sm:$0xff]  ;;  %v1726_v60 = vpack.c.bf16 %v197_v55, %v191_v54 }
  0xa2   :  { %v1728_v3 = vpack.c.bf16 %v196_v61, %v190_v59  ;;  %v257_v54 = vld [vmem:[#allocation2 + $0x718] sm:$0xff]  ;;  %v1992_v55 = vld [vmem:[%s2033_s0] sm:$0xff]  ;;  %v256_v61 = vld [vmem:[#allocation2 + $0x710] sm:$0xff] }
  0xa3   :  { %1561 = vmatpush1.bf16.msra.mxu1 %v1560_v6  ;;  %v1582_v6 = vpack.c.bf16 %v339_v1, %v333_v0  ;;  %v203_v0 = vld [vmem:[#allocation2 + $0x568] sm:$0xff]  ;;  %v209_v1 = vld [vmem:[#allocation2 + $0x598] sm:$0xff]  ;;  %v250_v59 = vld [vmem:[#allocation2 + $0x6e0] sm:$0xff] }
  0xa4   :  { %1689 = vmatpush1.bf16.msra.mxu0 %v1688_v19  ;;  %1563 = vmatprep.subr.bf16.mxu1 %v1562_v7  ;;  %v332_v19 = vld [vmem:[#allocation2 + $0x970] sm:$0xff]  ;;  %v338_v7 = vld [vmem:[#allocation2 + $0x9a0] sm:$0xff] }
  0xa5   :  { %1691 = vmatprep.subr.bf16.mxu0 %v1690_v11  ;;  %v345_v11 = vld [vmem:[#allocation2 + $0x9d8] sm:$0xff]  ;;  %v1584_v15 = vpack.c.bf16 %v338_v7, %v332_v19  ;;  %v202_v19 = vld [vmem:[#allocation2 + $0x560] sm:$0xff]  ;;  %v1730_v7 = vpack.c.bf16 %v209_v1, %v203_v0  ;;  %v263_v0 = vld [vmem:[#allocation2 + $0x748] sm:$0xff] }
  0xa6   :  { %v1732_v14 = vpack.c.bf16 %v208_v8, %v202_v19  ;;  %v269_v1 = vld [vmem:[#allocation2 + $0x778] sm:$0xff]  ;;  %v262_v19 = vld [vmem:[#allocation2 + $0x740] sm:$0xff]  ;;  %v268_v8 = vld [vmem:[#allocation2 + $0x770] sm:$0xff] }
  0xa7   :  { %1565 = vmatpush1.bf16.msra.mxu1 %v1564_v18  ;;  %v1586_v18 = vpack.c.bf16 %v351_v12, %v345_v11  ;;  %v215_v11 = vld [vmem:[#allocation2 + $0x5c8] sm:$0xff]  ;;  %v221_v12 = vld [vmem:[#allocation2 + $0x5f8] sm:$0xff] }
  0xa8   :  { %1693 = vmatpush1.bf16.msra.mxu0 %v1692_v21  ;;  %1567 = vmatprep.subr.bf16.mxu1 %v1566_v23  ;;  %v344_v21 = vld [vmem:[#allocation2 + $0x9d0] sm:$0xff]  ;;  %v350_v23 = vld [vmem:[#allocation2 + $0xa00] sm:$0xff] }
  0xa9   :  { %1695 = vmatprep.subr.bf16.mxu0 %v1694_v27  ;;  %v357_v27 = vld [vmem:[#allocation2 + $0xa38] sm:$0xff]  ;;  %v1588_v32 = vpack.c.bf16 %v350_v23, %v344_v21  ;;  %v214_v21 = vld [vmem:[#allocation2 + $0x5c0] sm:$0xff]  ;;  %v1734_v23 = vpack.c.bf16 %v221_v12, %v215_v11  ;;  %v275_v11 = vld [vmem:[#allocation2 + $0x7a8] sm:$0xff] }
  0xaa   :  { %v1736_v30 = vpack.c.bf16 %v220_v24, %v214_v21  ;;  %v281_v12 = vld [vmem:[#allocation2 + $0x7d8] sm:$0xff] }
  0xab   :  { %1569 = vmatpush1.bf16.msra.mxu1 %v1568_v35  ;;  %v1590_v35 = vpack.c.bf16 %v363_v28, %v357_v27  ;;  %v227_v27 = vld [vmem:[#allocation2 + $0x628] sm:$0xff]  ;;  %v233_v28 = vld [vmem:[#allocation2 + $0x658] sm:$0xff]  ;;  %v1754_v21 = vpack.c.bf16 %v281_v12, %v275_v11 }
  0xac   :  { %1697 = vmatpush1.bf16.msra.mxu0 %v1696_v36  ;;  %1571 = vmatprep.subr.bf16.mxu1 %v1570_v37  ;;  %v356_v36 = vld [vmem:[#allocation2 + $0xa30] sm:$0xff]  ;;  %v362_v37 = vld [vmem:[#allocation2 + $0xa60] sm:$0xff]  ;;  %v477_v24 = vld [vmem:[#allocation2 + $0xdf8] sm:$0xff] }
  0xad   :  { %1699 = vmatprep.subr.bf16.mxu0 %v1698_v41  ;;  %v369_v41 = vld [vmem:[#allocation2 + $0xa98] sm:$0xff]  ;;  %v1592_v45 = vpack.c.bf16 %v362_v37, %v356_v36  ;;  %v226_v36 = vld [vmem:[#allocation2 + $0x620] sm:$0xff]  ;;  %v1738_v37 = vpack.c.bf16 %v233_v28, %v227_v27 }
  0xae   :  { %v1740_v44 = vpack.c.bf16 %v232_v38, %v226_v36  ;;  %v293_v27 = vld [vmem:[#allocation2 + $0x838] sm:$0xff] }
  0xaf   :  { %1573 = vmatpush1.bf16.msra.mxu1 %v1572_v46  ;;  %v1594_v46 = vpack.c.bf16 %v375_v42, %v369_v41  ;;  %v239_v41 = vld [vmem:[#allocation2 + $0x688] sm:$0xff]  ;;  %v245_v42 = vld [vmem:[#allocation2 + $0x6b8] sm:$0xff] }
  0xb0   :  { %1701 = vmatpush1.bf16.msra.mxu0 %v1700_v47  ;;  %1575 = vmatprep.subr.bf16.mxu1 %v1574_v48  ;;  %v368_v47 = vld [vmem:[#allocation2 + $0xa90] sm:$0xff]  ;;  %v374_v48 = vld [vmem:[#allocation2 + $0xac0] sm:$0xff]  ;;  %v489_v38 = vld [vmem:[#allocation2 + $0xe58] sm:$0xff] }
  0xb1   :  { %1703 = vmatprep.subr.bf16.mxu0 %v1702_v52  ;;  %v381_v52 = vld [vmem:[#allocation2 + $0xaf8] sm:$0xff]  ;;  %v1596_v56 = vpack.c.bf16 %v374_v48, %v368_v47  ;;  %v238_v47 = vld [vmem:[#allocation2 + $0x680] sm:$0xff]  ;;  %v1742_v48 = vpack.c.bf16 %v245_v42, %v239_v41 }
  0xb2   :  { %v305_v41 = vld [vmem:[#allocation2 + $0x898] sm:$0xff] }
  0xb3   :  { %1577 = vmatpush1.bf16.msra.mxu1 %v1576_v16  ;;  %v1598_v16 = vpack.c.bf16 %v387_v53, %v381_v52  ;;  %v1986_v52 = vld [vmem:[%s2033_s0 + $0x8] sm:$0xff]  ;;  %v341_v11 = vld [vmem:[#allocation2 + $0x9b8] sm:$0xff] }
  0xb4   :  { %1705 = vmatpush1.bf16.msra.mxu0 %v1704_v58  ;;  %1579 = vmatprep.subr.bf16.mxu1 %v1578_v31  ;;  %v380_v58 = vld [vmem:[#allocation2 + $0xaf0] sm:$0xff]  ;;  %v386_v31 = vld [vmem:[#allocation2 + $0xb20] sm:$0xff]  ;;  %v251_v53 = vld [vmem:[#allocation2 + $0x6e8] sm:$0xff] }
  0xb5   :  { %1707 = vmatprep.subr.bf16.mxu0 %v1706_v62  ;;  %v393_v62 = vld [vmem:[#allocation2 + $0xb58] sm:$0xff]  ;;  %v1600_v2 = vpack.c.bf16 %v386_v31, %v380_v58  ;;  %v440_v58 = vld [vmem:[#allocation2 + $0xcd0] sm:$0xff]  ;;  %v446_v31 = vld [vmem:[#allocation2 + $0xd00] sm:$0xff] }
  0xb7   :  { %1581 = vmatpush1.bf16.msra.mxu1 %v1580_v4  ;;  %v1602_v4 = vpack.c.bf16 %v399_v63, %v393_v62  ;;  %v453_v62 = vld [vmem:[#allocation2 + $0xd38] sm:$0xff]  ;;  %v459_v63 = vld [vmem:[#allocation2 + $0xd68] sm:$0xff] }
  0xb8   :  { %1709 = vmatpush1.bf16.msra.mxu0 %v1708_v5  ;;  %1583 = vmatprep.subr.bf16.mxu1 %v1582_v6  ;;  %v392_v5 = vld [vmem:[#allocation2 + $0xb50] sm:$0xff]  ;;  %v398_v6 = vld [vmem:[#allocation2 + $0xb80] sm:$0xff] }
  0xb9   :  { %1711 = vmatprep.subr.bf16.mxu0 %v1710_v9  ;;  %v405_v9 = vld [vmem:[#allocation2 + $0xbb8] sm:$0xff]  ;;  %v1604_v13 = vpack.c.bf16 %v398_v6, %v392_v5  ;;  %v452_v5 = vld [vmem:[#allocation2 + $0xd30] sm:$0xff]  ;;  %v458_v6 = vld [vmem:[#allocation2 + $0xd60] sm:$0xff] }
  0xbb   :  { %1585 = vmatpush1.bf16.msra.mxu1 %v1584_v15  ;;  %v1606_v15 = vpack.c.bf16 %v411_v10, %v405_v9  ;;  %v465_v9 = vld [vmem:[#allocation2 + $0xd98] sm:$0xff]  ;;  %v471_v10 = vld [vmem:[#allocation2 + $0xdc8] sm:$0xff] }
  0xbc   :  { %1713 = vmatpush1.bf16.msra.mxu0 %v1712_v17  ;;  %1587 = vmatprep.subr.bf16.mxu1 %v1586_v18  ;;  %v404_v17 = vld [vmem:[#allocation2 + $0xbb0] sm:$0xff]  ;;  %v410_v18 = vld [vmem:[#allocation2 + $0xbe0] sm:$0xff] }
  0xbd   :  { %1715 = vmatprep.subr.bf16.mxu0 %v1714_v25  ;;  %v417_v25 = vld [vmem:[#allocation2 + $0xc18] sm:$0xff]  ;;  %v1608_v29 = vpack.c.bf16 %v410_v18, %v404_v17  ;;  %v470_v17 = vld [vmem:[#allocation2 + $0xdc0] sm:$0xff] }
  0xbe   :  { %v274_v18 = vld [vmem:[#allocation2 + $0x7a0] sm:$0xff] }
  0xbf   :  { %1589 = vmatpush1.bf16.msra.mxu1 %v1588_v32  ;;  %v1610_v32 = vpack.c.bf16 %v423_v26, %v417_v25  ;;  %v483_v25 = vld [vmem:[#allocation2 + $0xe28] sm:$0xff] }
  0xc0   :  { %1717 = vmatpush1.bf16.msra.mxu0 %v1716_v33  ;;  %1591 = vmatprep.subr.bf16.mxu1 %v1590_v35  ;;  %v416_v33 = vld [vmem:[#allocation2 + $0xc10] sm:$0xff]  ;;  %v422_v35 = vld [vmem:[#allocation2 + $0xc40] sm:$0xff]  ;;  %v287_v26 = vld [vmem:[#allocation2 + $0x808] sm:$0xff] }
  0xc1   :  { %1719 = vmatprep.subr.bf16.mxu0 %v1718_v39  ;;  %v429_v39 = vld [vmem:[#allocation2 + $0xc78] sm:$0xff]  ;;  %v1612_v43 = vpack.c.bf16 %v422_v35, %v416_v33  ;;  %v482_v33 = vld [vmem:[#allocation2 + $0xe20] sm:$0xff]  ;;  %v1758_v36 = vpack.c.bf16 %v293_v27, %v287_v26 }
  0xc2   :  { %v286_v35 = vld [vmem:[#allocation2 + $0x800] sm:$0xff]  ;;  %v353_v26 = vld [vmem:[#allocation2 + $0xa18] sm:$0xff] }
  0xc3   :  { %1593 = vmatpush1.bf16.msra.mxu1 %v1592_v45  ;;  %v1614_v45 = vpack.c.bf16 %v435_v40, %v429_v39  ;;  %v495_v39 = vld [vmem:[#allocation2 + $0xe88] sm:$0xff] }
  0xc4   :  { %1721 = vmatpush1.bf16.msra.mxu0 %v1720_v20  ;;  %1595 = vmatprep.subr.bf16.mxu1 %v1594_v46  ;;  %v428_v20 = vld [vmem:[#allocation2 + $0xc70] sm:$0xff]  ;;  %v434_v46 = vld [vmem:[#allocation2 + $0xca0] sm:$0xff]  ;;  %v299_v40 = vld [vmem:[#allocation2 + $0x868] sm:$0xff] }
  0xc5   :  { %1723 = vmatprep.subr.bf16.mxu0 %v1722_v50  ;;  %v441_v50 = vld [vmem:[#allocation2 + $0xcd8] sm:$0xff] }
  0xc7   :  { %1597 = vmatpush1.bf16.msra.mxu1 %v1596_v56  ;;  %v1616_v56 = vpack.c.bf16 %v434_v46, %v428_v20  ;;  %v494_v20 = vld [vmem:[#allocation2 + $0xe80] sm:$0xff] }
  0xc8   :  { %1725 = vmatpush1.bf16.msra.mxu0 %v1724_v57  ;;  %1599 = vmatprep.subr.bf16.mxu1 %v1598_v16  ;;  %v1744_v57 = vpack.c.bf16 %v244_v49, %v238_v47  ;;  %v1618_v16 = vpack.c.bf16 %v447_v51, %v441_v50  ;;  %v298_v46 = vld [vmem:[#allocation2 + $0x860] sm:$0xff]  ;;  %v1762_v47 = vpack.c.bf16 %v305_v41, %v299_v40  ;;  %v501_v49 = vld [vmem:[#allocation2 + $0xeb8] sm:$0xff]  ;;  %v507_v50 = vld [vmem:[#allocation2 + $0xee8] sm:$0xff] }
  0xc9   :  { %1727 = vmatprep.subr.bf16.mxu0 %v1726_v60  ;;  %v1746_v60 = vpack.c.bf16 %v257_v54, %v251_v53  ;;  %v311_v51 = vld [vmem:[#allocation2 + $0x8c8] sm:$0xff]  ;;  %v317_v53 = vld [vmem:[#allocation2 + $0x8f8] sm:$0xff] }
  0xca   :  { %v365_v40 = vld [vmem:[#allocation2 + $0xa78] sm:$0xff] }
  0xcb   :  { %1601 = vmatpush1.bf16.msra.mxu1 %v1600_v2  ;;  %v1620_v2 = vpack.c.bf16 %v446_v31, %v440_v58  ;;  %v506_v58 = vld [vmem:[#allocation2 + $0xee0] sm:$0xff] }
  0xcc   :  { %1729 = vmatpush1.bf16.msra.mxu0 %v1728_v3  ;;  %1603 = vmatprep.subr.bf16.mxu1 %v1602_v4  ;;  %v1748_v3 = vpack.c.bf16 %v256_v61, %v250_v59  ;;  %v1622_v4 = vpack.c.bf16 %v459_v63, %v453_v62  ;;  %v310_v31 = vld [vmem:[#allocation2 + $0x8c0] sm:$0xff]  ;;  %v1766_v59 = vpack.c.bf16 %v317_v53, %v311_v51  ;;  %v513_v61 = vld [vmem:[#allocation2 + $0xf18] sm:$0xff]  ;;  %v519_v62 = vld [vmem:[#allocation2 + $0xf48] sm:$0xff] }
  0xcd   :  { %1731 = vmatprep.subr.bf16.mxu0 %v1730_v7  ;;  %v1750_v7 = vpack.c.bf16 %v269_v1, %v263_v0  ;;  %v323_v63 = vld [vmem:[#allocation2 + $0x928] sm:$0xff]  ;;  %v329_v0 = vld [vmem:[#allocation2 + $0x958] sm:$0xff] }
  0xce   :  { %v377_v51 = vld [vmem:[#allocation2 + $0xad8] sm:$0xff] }
  0xcf   :  { %1605 = vmatpush1.bf16.msra.mxu1 %v1604_v13  ;;  %v1624_v13 = vpack.c.bf16 %v458_v6, %v452_v5  ;;  %v518_v5 = vld [vmem:[#allocation2 + $0xf40] sm:$0xff] }
  0xd0   :  { %1733 = vmatpush1.bf16.msra.mxu0 %v1732_v14  ;;  %1607 = vmatprep.subr.bf16.mxu1 %v1606_v15  ;;  %v1626_v14 = vpack.c.bf16 %v471_v10, %v465_v9  ;;  %v464_v15 = vld [vmem:[#allocation2 + $0xd90] sm:$0xff]  ;;  %v322_v6 = vld [vmem:[#allocation2 + $0x920] sm:$0xff]  ;;  %v531_v9 = vld [vmem:[#allocation2 + $0xfa8] sm:$0xff] }
  0xd1   :  { %1735 = vmatprep.subr.bf16.mxu0 %v1734_v23  ;;  %v280_v23 = vld [vmem:[#allocation2 + $0x7d0] sm:$0xff]  ;;  %v1628_v28 = vpack.c.bf16 %v470_v17, %v464_v15  ;;  %v335_v10 = vld [vmem:[#allocation2 + $0x988] sm:$0xff]  ;;  %v530_v15 = vld [vmem:[#allocation2 + $0xfa0] sm:$0xff] }
  0xd2   :  { %v334_v17 = vld [vmem:[#allocation2 + $0x980] sm:$0xff] }
  0xd3   :  { %1609 = vmatpush1.bf16.msra.mxu1 %v1608_v29  ;;  %v1756_v29 = vpack.c.bf16 %v280_v23, %v274_v18  ;;  %v1774_v18 = vpack.c.bf16 %v341_v11, %v335_v10  ;;  %v537_v23 = vld [vmem:[#allocation2 + $0xfd8] sm:$0xff] }
  0xd4   :  { %1737 = vmatpush1.bf16.msra.mxu0 %v1736_v30  ;;  %1611 = vmatprep.subr.bf16.mxu1 %v1610_v32  ;;  %v1630_v30 = vpack.c.bf16 %v483_v25, %v477_v24  ;;  %v476_v32 = vld [vmem:[#allocation2 + $0xdf0] sm:$0xff]  ;;  %v543_v24 = vld [vmem:[#allocation2 + $0x1008] sm:$0xff]  ;;  %v401_v10 = vld [vmem:[#allocation2 + $0xb98] sm:$0xff] }
  0xd5   :  { %1739 = vmatprep.subr.bf16.mxu0 %v1738_v37  ;;  %v292_v37 = vld [vmem:[#allocation2 + $0x830] sm:$0xff]  ;;  %v1632_v42 = vpack.c.bf16 %v482_v33, %v476_v32  ;;  %v347_v25 = vld [vmem:[#allocation2 + $0x9e8] sm:$0xff]  ;;  %v542_v32 = vld [vmem:[#allocation2 + $0x1000] sm:$0xff] }
  0xd6   :  { %964 = vmatmul.mubr.f32.vlgmr.msra.gmra.mrb[2].mxu1 %v1986_v52  ;;  %v346_v33 = vld [vmem:[#allocation2 + $0x9e0] sm:$0xff] }
  0xd7   :  { %1613 = vmatpush1.bf16.msra.mxu1 %v1612_v43  ;;  %1106 = vmatmul.mubr.f32.vlgmr.msra.gmra.mrb[2].mxu0 %v1992_v55  ;;  %v1760_v43 = vpack.c.bf16 %v292_v37, %v286_v35  ;;  %v1778_v35 = vpack.c.bf16 %v353_v26, %v347_v25  ;;  %v549_v37 = vld [vmem:[#allocation2 + $0x1038] sm:$0xff] }
  0xd8   :  { %1741 = vmatpush1.bf16.msra.mxu0 %v1740_v44  ;;  %1615 = vmatprep.subr.bf16.mxu1 %v1614_v45  ;;  %v1634_v44 = vpack.c.bf16 %v495_v39, %v489_v38  ;;  %v488_v45 = vld [vmem:[#allocation2 + $0xe50] sm:$0xff]  ;;  %v555_v38 = vld [vmem:[#allocation2 + $0x1068] sm:$0xff]  ;;  %v413_v25 = vld [vmem:[#allocation2 + $0xbf8] sm:$0xff] }
  0xd9   :  { %1743 = vmatprep.subr.bf16.mxu0 %v1742_v48  ;;  %1034 = vmatprep.mubr.f32.mxu1 %v1976_v34  ;;  %v304_v48 = vld [vmem:[#allocation2 + $0x890] sm:$0xff]  ;;  %v1636_v54 = vpack.c.bf16 %v494_v20, %v488_v45  ;;  %v359_v39 = vld [vmem:[#allocation2 + $0xa48] sm:$0xff]  ;;  %v554_v45 = vld [vmem:[#allocation2 + $0x1060] sm:$0xff] }
  0xda   :  { %1176 = vmatprep.mubr.f32.mxu0 %v1962_v22  ;;  %v1752_v22 = vpack.c.bf16 %v268_v8, %v262_v19  ;;  %v1770_v19 = vpack.c.bf16 %v329_v0, %v323_v63  ;;  %v525_v8 = vld [vmem:[#allocation2 + $0xf78] sm:$0xff]  ;;  %v358_v20 = vld [vmem:[#allocation2 + $0xa40] sm:$0xff] }
  0xdb   :  { %1617 = vmatpush1.bf16.msra.mxu1 %v1616_v56  ;;  %v1764_v56 = vpack.c.bf16 %v304_v48, %v298_v46  ;;  %v1782_v46 = vpack.c.bf16 %v365_v40, %v359_v39  ;;  %v561_v48 = vld [vmem:[#allocation2 + $0x1098] sm:$0xff] }
  0xdc   :  { %1745 = vmatpush1.bf16.msra.mxu0 %v1744_v57  ;;  %1619 = vmatprep.subr.bf16.mxu1 %v1618_v16  ;;  %v1638_v57 = vpack.c.bf16 %v507_v50, %v501_v49  ;;  %v500_v16 = vld [vmem:[#allocation2 + $0xeb0] sm:$0xff]  ;;  %v567_v49 = vld [vmem:[#allocation2 + $0x10c8] sm:$0xff]  ;;  %v389_v63 = vld [vmem:[#allocation2 + $0xb38] sm:$0xff] }
  0xdd   :  { %1747 = vmatprep.subr.bf16.mxu0 %v1746_v60  ;;  %v316_v60 = vld [vmem:[#allocation2 + $0x8f0] sm:$0xff]  ;;  %v1640_v1 = vpack.c.bf16 %v506_v58, %v500_v16  ;;  %v371_v50 = vld [vmem:[#allocation2 + $0xaa8] sm:$0xff]  ;;  %v566_v16 = vld [vmem:[#allocation2 + $0x10c0] sm:$0xff] }
  0xde   :  { %v370_v58 = vld [vmem:[#allocation2 + $0xaa0] sm:$0xff] }
  0xdf   :  { %1621 = vmatpush1.bf16.msra.mxu1 %v1620_v2  ;;  %v1768_v2 = vpack.c.bf16 %v316_v60, %v310_v31  ;;  %v1786_v31 = vpack.c.bf16 %v377_v51, %v371_v50  ;;  %v573_v60 = vld [vmem:[#allocation2 + $0x10f8] sm:$0xff] }
  0xe0   :  { %1749 = vmatpush1.bf16.msra.mxu0 %v1748_v3  ;;  %1623 = vmatprep.subr.bf16.mxu1 %v1622_v4  ;;  %v1642_v3 = vpack.c.bf16 %v519_v62, %v513_v61  ;;  %v512_v4 = vld [vmem:[#allocation2 + $0xf10] sm:$0xff]  ;;  %v579_v61 = vld [vmem:[#allocation2 + $0x1128] sm:$0xff]  ;;  %v449_v50 = vld [vmem:[#allocation2 + $0xd18] sm:$0xff] }
  0xe1   :  { %1751 = vmatprep.subr.bf16.mxu0 %v1750_v7  ;;  %v328_v7 = vld [vmem:[#allocation2 + $0x950] sm:$0xff]  ;;  %v1644_v12 = vpack.c.bf16 %v518_v5, %v512_v4  ;;  %v383_v62 = vld [vmem:[#allocation2 + $0xb08] sm:$0xff]  ;;  %v578_v4 = vld [vmem:[#allocation2 + $0x1120] sm:$0xff] }
  0xe2   :  { %v382_v5 = vld [vmem:[#allocation2 + $0xb00] sm:$0xff] }
  0xe3   :  { %1625 = vmatpush1.bf16.msra.mxu1 %v1624_v13  ;;  %v1772_v13 = vpack.c.bf16 %v328_v7, %v322_v6  ;;  %v1790_v6 = vpack.c.bf16 %v389_v63, %v383_v62  ;;  %v585_v7 = vld [vmem:[#allocation2 + $0x1158] sm:$0xff] }
  0xe4   :  { %1753 = vmatpush1.bf16.msra.mxu0 %v1752_v22  ;;  %1627 = vmatprep.subr.bf16.mxu1 %v1626_v14  ;;  %v1646_v22 = vpack.c.bf16 %v531_v9, %v525_v8  ;;  %v524_v14 = vld [vmem:[#allocation2 + $0xf70] sm:$0xff]  ;;  %v591_v8 = vld [vmem:[#allocation2 + $0x1188] sm:$0xff]  ;;  %v473_v62 = vld [vmem:[#allocation2 + $0xdd8] sm:$0xff] }
  0xe5   :  { %1755 = vmatprep.subr.bf16.mxu0 %v1754_v21  ;;  %v340_v21 = vld [vmem:[#allocation2 + $0x9b0] sm:$0xff]  ;;  %v1648_v27 = vpack.c.bf16 %v530_v15, %v524_v14  ;;  %v395_v9 = vld [vmem:[#allocation2 + $0xb68] sm:$0xff]  ;;  %v590_v14 = vld [vmem:[#allocation2 + $0x1180] sm:$0xff] }
  0xe6   :  { %v394_v15 = vld [vmem:[#allocation2 + $0xb60] sm:$0xff] }
  0xe7   :  { %1629 = vmatpush1.bf16.msra.mxu1 %v1628_v28  ;;  %v1776_v28 = vpack.c.bf16 %v340_v21, %v334_v17  ;;  %v1794_v17 = vpack.c.bf16 %v401_v10, %v395_v9  ;;  %v597_v21 = vld [vmem:[#allocation2 + $0x11b8] sm:$0xff] }
  0xe8   :  { %1757 = vmatpush1.bf16.msra.mxu0 %v1756_v29  ;;  %1631 = vmatprep.subr.bf16.mxu1 %v1630_v30  ;;  %v1650_v29 = vpack.c.bf16 %v543_v24, %v537_v23  ;;  %v536_v30 = vld [vmem:[#allocation2 + $0xfd0] sm:$0xff]  ;;  %v603_v23 = vld [vmem:[#allocation2 + $0x11e8] sm:$0xff] }
  0xe9   :  { %1759 = vmatprep.subr.bf16.mxu0 %v1758_v36  ;;  %v352_v36 = vld [vmem:[#allocation2 + $0xa10] sm:$0xff]  ;;  %v1652_v41 = vpack.c.bf16 %v542_v32, %v536_v30  ;;  %v407_v24 = vld [vmem:[#allocation2 + $0xbc8] sm:$0xff]  ;;  %v602_v30 = vld [vmem:[#allocation2 + $0x11e0] sm:$0xff] }
  0xea   :  { %v1798_v32 = vpack.c.bf16 %v413_v25, %v407_v24  ;;  %v515_v24 = vld [vmem:[#allocation2 + $0xf28] sm:$0xff]  ;;  %v521_v25 = vld [vmem:[#allocation2 + $0xf58] sm:$0xff] }
  0xeb   :  { %1633 = vmatpush1.bf16.msra.mxu1 %v1632_v42  ;;  %v1780_v42 = vpack.c.bf16 %v352_v36, %v346_v33  ;;  %v406_v33 = vld [vmem:[#allocation2 + $0xbc0] sm:$0xff]  ;;  %v419_v36 = vld [vmem:[#allocation2 + $0xc28] sm:$0xff] }
  0xec   :  { %1761 = vmatpush1.bf16.msra.mxu0 %v1760_v43  ;;  %1635 = vmatprep.subr.bf16.mxu1 %v1634_v44  ;;  %v1654_v43 = vpack.c.bf16 %v555_v38, %v549_v37  ;;  %v548_v44 = vld [vmem:[#allocation2 + $0x1030] sm:$0xff]  ;;  %v425_v37 = vld [vmem:[#allocation2 + $0xc58] sm:$0xff] }
  0xed   :  { %1763 = vmatprep.subr.bf16.mxu0 %v1762_v47  ;;  %v364_v47 = vld [vmem:[#allocation2 + $0xa70] sm:$0xff]  ;;  %v1656_v53 = vpack.c.bf16 %v554_v45, %v548_v44  ;;  %v1802_v40 = vpack.c.bf16 %v425_v37, %v419_v36  ;;  %v437_v44 = vld [vmem:[#allocation2 + $0xcb8] sm:$0xff]  ;;  %v526_v36 = vld [vmem:[#allocation2 + $0xf80] sm:$0xff] }
  0xee   :  { %v532_v37 = vld [vmem:[#allocation2 + $0xfb0] sm:$0xff] }
  0xef   :  { %1637 = vmatpush1.bf16.msra.mxu1 %v1636_v54  ;;  %v1784_v54 = vpack.c.bf16 %v364_v47, %v358_v20  ;;  %v436_v47 = vld [vmem:[#allocation2 + $0xcb0] sm:$0xff] }
  0xf0   :  { %1765 = vmatpush1.bf16.msra.mxu0 %v1764_v56  ;;  %1639 = vmatprep.subr.bf16.mxu1 %v1638_v57  ;;  %v1658_v56 = vpack.c.bf16 %v567_v49, %v561_v48  ;;  %v560_v57 = vld [vmem:[#allocation2 + $0x1090] sm:$0xff]  ;;  %v443_v49 = vld [vmem:[#allocation2 + $0xce8] sm:$0xff] }
  0xf1   :  { %1767 = vmatprep.subr.bf16.mxu0 %v1766_v59  ;;  %v376_v59 = vld [vmem:[#allocation2 + $0xad0] sm:$0xff]  ;;  %v1660_v0 = vpack.c.bf16 %v566_v16, %v560_v57  ;;  %v455_v57 = vld [vmem:[#allocation2 + $0xd48] sm:$0xff]  ;;  %v461_v16 = vld [vmem:[#allocation2 + $0xd78] sm:$0xff] }
  0xf2   :  { %v2000_v48 = vld [vmem:[%s2033_s0 + $0x10] sm:$0xff] }
  0xf3   :  { %1641 = vmatpush1.bf16.msra.mxu1 %v1640_v1  ;;  %v1788_v1 = vpack.c.bf16 %v376_v59, %v370_v58  ;;  %v454_v59 = vld [vmem:[#allocation2 + $0xd40] sm:$0xff] }
  0xf4   :  { %1769 = vmatpush1.bf16.msra.mxu0 %v1768_v2  ;;  %1643 = vmatprep.subr.bf16.mxu1 %v1642_v3  ;;  %v1662_v2 = vpack.c.bf16 %v579_v61, %v573_v60  ;;  %v572_v3 = vld [vmem:[#allocation2 + $0x10f0] sm:$0xff]  ;;  %v467_v61 = vld [vmem:[#allocation2 + $0xda8] sm:$0xff] }
  0xf5   :  { %1771 = vmatprep.subr.bf16.mxu0 %v1770_v19  ;;  %v388_v19 = vld [vmem:[#allocation2 + $0xb30] sm:$0xff]  ;;  %v1664_v11 = vpack.c.bf16 %v578_v4, %v572_v3  ;;  %v485_v3 = vld [vmem:[#allocation2 + $0xe38] sm:$0xff] }
  0xf6   :  { %v460_v60 = vld [vmem:[#allocation2 + $0xd70] sm:$0xff] }
  0xf7   :  { %1645 = vmatpush1.bf16.msra.mxu1 %v1644_v12  ;;  %v1792_v12 = vpack.c.bf16 %v388_v19, %v382_v5  ;;  %v1816_v63 = vpack.c.bf16 %v460_v60, %v454_v59  ;;  %v484_v19 = vld [vmem:[#allocation2 + $0xe30] sm:$0xff]  ;;  %v574_v60 = vld [vmem:[#allocation2 + $0x1100] sm:$0xff] }
  0xf8   :  { %1773 = vmatpush1.bf16.msra.mxu0 %v1772_v13  ;;  %1647 = vmatprep.subr.bf16.mxu1 %v1646_v22  ;;  %v1666_v13 = vpack.c.bf16 %v591_v8, %v585_v7  ;;  %v584_v22 = vld [vmem:[#allocation2 + $0x1150] sm:$0xff]  ;;  %v491_v7 = vld [vmem:[#allocation2 + $0xe68] sm:$0xff]  ;;  %v497_v8 = vld [vmem:[#allocation2 + $0xe98] sm:$0xff] }
  0xf9   :  { %1775 = vmatprep.subr.bf16.mxu0 %v1774_v18  ;;  %v400_v18 = vld [vmem:[#allocation2 + $0xb90] sm:$0xff]  ;;  %v1668_v26 = vpack.c.bf16 %v590_v14, %v584_v22  ;;  %v1826_v10 = vpack.c.bf16 %v497_v8, %v491_v7  ;;  %v503_v22 = vld [vmem:[#allocation2 + $0xec8] sm:$0xff]  ;;  %v509_v14 = vld [vmem:[#allocation2 + $0xef8] sm:$0xff] }
  0xfa   :  { %v604_v7 = vld [vmem:[#allocation2 + $0x11f0] sm:$0xff] }
  0xfb   :  { %1649 = vmatpush1.bf16.msra.mxu1 %v1648_v27  ;;  %v1796_v27 = vpack.c.bf16 %v400_v18, %v394_v15  ;;  %v1830_v18 = vpack.c.bf16 %v509_v14, %v503_v22 }
  0xfc   :  { %1777 = vmatpush1.bf16.msra.mxu0 %v1776_v28  ;;  %1651 = vmatprep.subr.bf16.mxu1 %v1650_v29  ;;  %v1670_v28 = vpack.c.bf16 %v603_v23, %v597_v21  ;;  %v596_v29 = vld [vmem:[#allocation2 + $0x11b0] sm:$0xff]  ;;  %v502_v21 = vld [vmem:[#allocation2 + $0xec0] sm:$0xff] }
  0xfd   :  { %1779 = vmatprep.subr.bf16.mxu0 %v1778_v35  ;;  %v412_v35 = vld [vmem:[#allocation2 + $0xbf0] sm:$0xff]  ;;  %v1672_v38 = vpack.c.bf16 %v602_v30, %v596_v29  ;;  %v527_v30 = vld [vmem:[#allocation2 + $0xf88] sm:$0xff] }
  0xfe   :  { %v1800_v39 = vpack.c.bf16 %v412_v35, %v406_v33  ;;  %v508_v23 = vld [vmem:[#allocation2 + $0xef0] sm:$0xff] }
  0xff   :  { %1653 = vmatpush1.bf16.msra.mxu1 %v1652_v41  ;;  %v418_v41 = vld [vmem:[#allocation2 + $0xc20] sm:$0xff]  ;;  %v520_v29 = vld [vmem:[#allocation2 + $0xf50] sm:$0xff] }
 0x100   :  { %1781 = vmatpush1.bf16.msra.mxu0 %v1780_v42  ;;  %1655 = vmatprep.subr.bf16.mxu1 %v1654_v43  ;;  %v424_v42 = vld [vmem:[#allocation2 + $0xc50] sm:$0xff]  ;;  %v431_v43 = vld [vmem:[#allocation2 + $0xc88] sm:$0xff] }
 0x101   :  { %1783 = vmatprep.subr.bf16.mxu0 %v1782_v46  ;;  %v1804_v45 = vpack.c.bf16 %v424_v42, %v418_v41  ;;  %v1806_v20 = vpack.c.bf16 %v437_v44, %v431_v43  ;;  %v430_v46 = vld [vmem:[#allocation2 + $0xc80] sm:$0xff]  ;;  %v544_v43 = vld [vmem:[#allocation2 + $0x1010] sm:$0xff]  ;;  %v551_v44 = vld [vmem:[#allocation2 + $0x1048] sm:$0xff] }
 0x102   :  { %v1808_v51 = vpack.c.bf16 %v436_v47, %v430_v46  ;;  %v538_v42 = vld [vmem:[#allocation2 + $0xfe0] sm:$0xff] }
 0x103   :  { %1657 = vmatpush1.bf16.msra.mxu1 %v1656_v53  ;;  %v1810_v53 = vpack.c.bf16 %v449_v50, %v443_v49  ;;  %v550_v47 = vld [vmem:[#allocation2 + $0x1040] sm:$0xff]  ;;  %v556_v49 = vld [vmem:[#allocation2 + $0x1070] sm:$0xff]  ;;  %v563_v50 = vld [vmem:[#allocation2 + $0x10a8] sm:$0xff] }
 0x104   :  { %1785 = vmatpush1.bf16.msra.mxu0 %v1784_v54  ;;  %1659 = vmatprep.subr.bf16.mxu1 %v1658_v56  ;;  %v442_v54 = vld [vmem:[#allocation2 + $0xce0] sm:$0xff]  ;;  %v448_v56 = vld [vmem:[#allocation2 + $0xd10] sm:$0xff] }
 0x105   :  { %1787 = vmatprep.subr.bf16.mxu0 %v1786_v31  ;;  %v1812_v58 = vpack.c.bf16 %v448_v56, %v442_v54  ;;  %v1814_v31 = vpack.c.bf16 %v461_v16, %v455_v57  ;;  %v562_v56 = vld [vmem:[#allocation2 + $0x10a0] sm:$0xff]  ;;  %v568_v57 = vld [vmem:[#allocation2 + $0x10d0] sm:$0xff]  ;;  %v575_v16 = vld [vmem:[#allocation2 + $0x1108] sm:$0xff] }
 0x107   :  { %1661 = vmatpush1.bf16.msra.mxu1 %v1660_v0  ;;  %v1818_v0 = vpack.c.bf16 %v473_v62, %v467_v61  ;;  %v580_v61 = vld [vmem:[#allocation2 + $0x1130] sm:$0xff]  ;;  %v587_v62 = vld [vmem:[#allocation2 + $0x1168] sm:$0xff] }
 0x108   :  { %1789 = vmatpush1.bf16.msra.mxu0 %v1788_v1  ;;  %1663 = vmatprep.subr.bf16.mxu1 %v1662_v2  ;;  %v466_v1 = vld [vmem:[#allocation2 + $0xda0] sm:$0xff]  ;;  %v479_v2 = vld [vmem:[#allocation2 + $0xe08] sm:$0xff] }
 0x109   :  { %1791 = vmatprep.subr.bf16.mxu0 %v1790_v6  ;;  %v1822_v5 = vpack.c.bf16 %v485_v3, %v479_v2  ;;  %v478_v6 = vld [vmem:[#allocation2 + $0xe00] sm:$0xff]  ;;  %v592_v2 = vld [vmem:[#allocation2 + $0x1190] sm:$0xff]  ;;  %v599_v3 = vld [vmem:[#allocation2 + $0x11c8] sm:$0xff] }
 0x10a   :  { %v1824_v9 = vpack.c.bf16 %v484_v19, %v478_v6  ;;  %v598_v19 = vld [vmem:[#allocation2 + $0x11c0] sm:$0xff] }
 0x10b   :  { %1665 = vmatpush1.bf16.msra.mxu1 %v1664_v11  ;;  %v490_v11 = vld [vmem:[#allocation2 + $0xe60] sm:$0xff]  ;;  %v1864_v8 = vpack.c.bf16 %v604_v7, %v598_v19 }
 0x10c   :  { %1793 = vmatpush1.bf16.msra.mxu0 %v1792_v12  ;;  %1667 = vmatprep.subr.bf16.mxu1 %v1666_v13  ;;  %v496_v12 = vld [vmem:[#allocation2 + $0xe90] sm:$0xff] }
 0x10d   :  { %1795 = vmatprep.subr.bf16.mxu0 %v1794_v17  ;;  %v1828_v17 = vpack.c.bf16 %v496_v12, %v490_v11 }
 0x10f   :  { %1669 = vmatpush1.bf16.msra.mxu1 %v1668_v26  ;;  %v1832_v26 = vpack.c.bf16 %v508_v23, %v502_v21 }
 0x110   :  { %1797 = vmatpush1.bf16.msra.mxu0 %v1796_v27  ;;  %1671 = vmatprep.subr.bf16.mxu1 %v1670_v28  ;;  %v1834_v27 = vpack.c.bf16 %v521_v25, %v515_v24  ;;  %v514_v28 = vld [vmem:[#allocation2 + $0xf20] sm:$0xff] }
 0x111   :  { %1799 = vmatprep.subr.bf16.mxu0 %v1798_v32  ;;  %v533_v32 = vld [vmem:[#allocation2 + $0xfb8] sm:$0xff]  ;;  %v1836_v33 = vpack.c.bf16 %v520_v29, %v514_v28 }
 0x112   :  { %v1838_v35 = vpack.c.bf16 %v533_v32, %v527_v30 }
 0x113   :  { %1673 = vmatpush1.bf16.msra.mxu1 %v1672_v38  ;;  %v539_v38 = vld [vmem:[#allocation2 + $0xfe8] sm:$0xff] }
 0x114   :  { %1801 = vmatpush1.bf16.msra.mxu0 %v1800_v39  ;;  %v545_v39 = vld [vmem:[#allocation2 + $0x1018] sm:$0xff] }
 0x115   :  { %1803 = vmatprep.subr.bf16.mxu0 %v1802_v40  ;;  %v1840_v40 = vpack.c.bf16 %v532_v37, %v526_v36  ;;  %v1842_v41 = vpack.c.bf16 %v545_v39, %v539_v38 }
 0x116   :  { %1035 = vmatmul.mubr.f32.vlgmr.msra.gmra.mrb[2].mxu1 %v2000_v48 }
 0x117   :  { %1177 = vmatmul.mubr.f32.vlgmr.msra.gmra.mrb[2].mxu0 %v1986_v52 }
 0x118   :  { %1805 = vmatpush1.bf16.msra.mxu0 %v1804_v45  ;;  %1247 = vmatprep.mubr.f32.mxu0 %v1976_v34  ;;  %v472_v34 = vld [vmem:[#allocation2 + $0xdd0] sm:$0xff]  ;;  %v557_v45 = vld [vmem:[#allocation2 + $0x1078] sm:$0xff] }
 0x119   :  { %1807 = vmatprep.subr.bf16.mxu0 %v1806_v20  ;;  %v1820_v4 = vpack.c.bf16 %v472_v34, %v466_v1  ;;  %v1844_v20 = vpack.c.bf16 %v544_v43, %v538_v42  ;;  %v1846_v46 = vpack.c.bf16 %v557_v45, %v551_v44  ;;  %v586_v34 = vld [vmem:[#allocation2 + $0x1160] sm:$0xff] }
 0x11c   :  { %1809 = vmatpush1.bf16.msra.mxu0 %v1808_v51  ;;  %v569_v51 = vld [vmem:[#allocation2 + $0x10d8] sm:$0xff] }
 0x11d   :  { %1811 = vmatprep.subr.bf16.mxu0 %v1810_v53  ;;  %v1848_v53 = vpack.c.bf16 %v556_v49, %v550_v47  ;;  %v1850_v54 = vpack.c.bf16 %v569_v51, %v563_v50 }
 0x120   :  { %1813 = vmatpush1.bf16.msra.mxu0 %v1812_v58  ;;  %v581_v58 = vld [vmem:[#allocation2 + $0x1138] sm:$0xff] }
 0x121   :  { %1815 = vmatprep.subr.bf16.mxu0 %v1814_v31  ;;  %v1852_v31 = vpack.c.bf16 %v568_v57, %v562_v56  ;;  %v1854_v59 = vpack.c.bf16 %v581_v58, %v575_v16 }
 0x124   :  { %1817 = vmatpush1.bf16.msra.mxu0 %v1816_v63  ;;  %v593_v63 = vld [vmem:[#allocation2 + $0x1198] sm:$0xff] }
 0x125   :  { %1819 = vmatprep.subr.bf16.mxu0 %v1818_v0  ;;  %v1856_v0 = vpack.c.bf16 %v580_v61, %v574_v60  ;;  %v1858_v1 = vpack.c.bf16 %v593_v63, %v587_v62 }
 0x128   :  { %1821 = vmatpush1.bf16.msra.mxu0 %v1820_v4  ;;  %v605_v4 = vld [vmem:[#allocation2 + $0x11f8] sm:$0xff] }
 0x129   :  { %1823 = vmatprep.subr.bf16.mxu0 %v1822_v5  ;;  %v2005_v13 = vpop.f32.mrb[0].mxu1  ;;  %v1860_v5 = vpack.c.bf16 %v592_v2, %v586_v34  ;;  %v1862_v6 = vpack.c.bf16 %v605_v4, %v599_v3 }
 0x12a   :  { %v2007_v15 = vpop.f32.mrb[1].mxu1 }
 0x12c   :  { %1825 = vmatpush1.bf16.msra.mxu0 %v1824_v9 }
 0x12d   :  { %1827 = vmatprep.subr.bf16.mxu0 %v1826_v10 }
 0x130   :  { %1829 = vmatpush1.bf16.msra.mxu0 %v1828_v17 }
 0x131   :  { %1831 = vmatprep.subr.bf16.mxu0 %v1830_v18 }
 0x134   :  { %1833 = vmatpush1.bf16.msra.mxu0 %v1832_v26 }
 0x135   :  { %1835 = vmatprep.subr.bf16.mxu0 %v1834_v27 }
 0x138   :  { %1837 = vmatpush1.bf16.msra.mxu0 %v1836_v33 }
 0x139   :  { %1839 = vmatprep.subr.bf16.mxu0 %v1838_v35 }
 0x13c   :  { %1841 = vmatpush1.bf16.msra.mxu0 %v1840_v40 }
 0x13d   :  { %1843 = vmatprep.subr.bf16.mxu0 %v1842_v41 }
 0x140   :  { %1845 = vmatpush1.bf16.msra.mxu0 %v1844_v20 }
 0x141   :  { %1847 = vmatprep.subr.bf16.mxu0 %v1846_v46 }
 0x144   :  { %1849 = vmatpush1.bf16.msra.mxu0 %v1848_v53 }
 0x145   :  { %1851 = vmatprep.subr.bf16.mxu0 %v1850_v54 }
 0x148   :  { %1853 = vmatpush1.bf16.msra.mxu0 %v1852_v31 }
 0x149   :  { %1855 = vmatprep.subr.bf16.mxu0 %v1854_v59 }
 0x14c   :  { %1857 = vmatpush1.bf16.msra.mxu0 %v1856_v0 }
 0x14d   :  { %1859 = vmatprep.subr.bf16.mxu0 %v1858_v1 }
 0x150   :  { %1861 = vmatpush1.bf16.msra.mxu0 %v1860_v5 }
 0x151   :  { %1863 = vmatprep.subr.bf16.mxu0 %v1862_v6 }
 0x154   :  { %1865 = vmatpush1.bf16.msra.mxu0 %v1864_v8 }
 0x157   :  { %1248 = vmatmul.mubr.f32.vlgmr.msra.gmra.mrb[2].mxu0 %v2000_v48 }
 0x16a   :  { %v823_v9 = vpop.f32.mrb[0].mxu0 }
 0x16b   :  { %v1866_v10 = vadd.f32 %v823_v9, %v2005_v13  ;;  %v825_v11 = vpop.f32.mrb[1].mxu0 }
 0x16c   :  { %v1867_v12 = vadd.f32 %v825_v11, %v2007_v15 }
 0x16d   :  { %v1254_v22 = vmul.f32 0.04, %v1866_v10 }
 0x16e   :  { %v1255_v14 = vmul.f32 0.04, %v1867_v12 }
 0x170   :  { %v1266_v17 = vcombine.low %v1254_v22, %v1255_v14 }
 0x172   :  { %1272 = vst [vmem:[%s2036_s3] sm:$0xff] %v1266_v17  ;;  %v1275_v18 = vsub.f32 %v1992_v55, %v1266_v17 }
 0x174   :  { %1278 = vst [vmem:[%s2035_s2] sm:$0xff] %v1275_v18 }
 0x1e9   :  { %v1036_v21 = vpop.f32.mrb[2].mxu1 }
 0x1ea   :  { %v1256_v23 = vmul.f32 0.04, %v1036_v21  ;;  %v1038_v24 = vpop.f32.mrb[3].mxu1 }
 0x1eb   :  { %v1257_v13 = vmul.f32 0.04, %v1038_v24 }
 0x1ed   :  { %v1267_v25 = vcombine.low %v1256_v23, %v1257_v13 }
 0x1ef   :  { %1273 = vst [vmem:[%s2036_s3 + $0x8] sm:$0xff] %v1267_v25  ;;  %v1276_v15 = vsub.f32 %v1986_v52, %v1267_v25 }
 0x1f1   :  { %1279 = vst [vmem:[%s2035_s2 + $0x8] sm:$0xff] %v1276_v15 }
 0x22a   :  { %v1249_v55 = vpop.f32.mrb[2].mxu0 }
 0x22b   :  { %v1258_v26 = vmul.f32 0.04, %v1249_v55  ;;  %v1251_v27 = vpop.f32.mrb[3].mxu0 }
 0x22c   :  { %v1259_v28 = vmul.f32 0.04, %v1251_v27 }
 0x22e   :  { %v1268_v29 = vcombine.low %v1258_v26, %v1259_v28 }
 0x230   :  { %1274 = vst [vmem:[%s2036_s3 + $0x10] sm:$0xff] %v1268_v29  ;;  %v1277_v30 = vsub.f32 %v2000_v48, %v1268_v29 }
 0x232   :  { %1280 = vst [vmem:[%s2035_s2 + $0x10] sm:$0xff] %v1277_v30 }
 0x233   :  { %1289 = vsyncpa [#allocation3], 1 }

</bundles_post_ra>
